<compile_context>
chip_gen: v7x
topology: tpu7x:2x2x1
jax: 0.10.0
libtpu: 0.0.40
codegen_flags: <defaults>
</compile_context>

<pallas_src>
import jax
import jax.numpy as jnp
from jax import lax
from jax.experimental import pallas as pl
from jax.experimental.pallas import tpu as pltpu


def mm_cat4(x1, x2, *, tk=8192):
    """Returns concat([x1 @ x2] * 4, axis=1) via a single Pallas TPU kernel."""
    M, K = x1.shape
    K2, N = x2.shape
    assert K == K2, "inner dimensions must match"

    if K <= tk:
        # Single full-extent block: no (8,128) divisibility requirement and no
        # remainder masking needed.
        tk = K
    else:
        assert tk % 128 == 0, "tk must be a multiple of 128 when K > tk"

    num_k = pl.cdiv(K, tk)
    rem = K % tk  # valid elements in the last (partial) K block; 0 => all full

    def kernel(x1_ref, x2_ref, o_ref, acc_ref):
        k = pl.program_id(0)
        nk = pl.num_programs(0)

        @pl.when(k == 0)
        def _init():
            acc_ref[...] = jnp.zeros_like(acc_ref)

        def accumulate(a, b):
            acc_ref[...] += jnp.dot(
                a,
                b,
                preferred_element_type=jnp.float32,
                precision=lax.Precision.HIGHEST,
            )

        if rem == 0:
            # Every block is full — no masking anywhere.
            accumulate(x1_ref[...], x2_ref[...])
        else:
            @pl.when(k < nk - 1)
            def _full():
                accumulate(x1_ref[...], x2_ref[...])

            @pl.when(k == nk - 1)
            def _partial():
                # Zero the K-padding of the last block (stale VMEM past the
                # array edge) so it cannot pollute the accumulation.  This
                # masking only runs on the single partial step.
                ids_a = lax.broadcasted_iota(jnp.int32, (M, tk), 1)
                a = jnp.where(ids_a < rem, x1_ref[...], 0.0)
                ids_b = lax.broadcasted_iota(jnp.int32, (tk, N), 0)
                b = jnp.where(ids_b < rem, x2_ref[...], 0.0)
                accumulate(a, b)

        @pl.when(k == nk - 1)
        def _store():
            c = acc_ref[...]
            # torch.cat([v1, v2, v2, v2], 1) with v1 == v2 == C — one tiny
            # lane-concat + a single full-block store (output is 3x20).
            o_ref[...] = jnp.concatenate([c, c, c, c], axis=1).astype(o_ref.dtype)

    itemsize = jnp.dtype(x1.dtype).itemsize
    cost = pl.CostEstimate(
        flops=2 * M * K * N,
        transcendentals=0,
        bytes_accessed=(M * K + K * N + M * 4 * N) * itemsize,
    )

    return pl.pallas_call(
        kernel,
        out_shape=jax.ShapeDtypeStruct((M, 4 * N), x1.dtype),
        grid_spec=pltpu.PrefetchScalarGridSpec(
            num_scalar_prefetch=0,
            grid=(num_k,),
            in_specs=[
                # (M, tk): M equals the full dim, tk is a multiple of 128.
                pl.BlockSpec((M, tk), lambda k: (0, k)),
                # (tk, N): contiguous rows of the untransposed x2; tk % 8 == 0,
                # N equals the full dim (lane padding is VMEM-only).
                pl.BlockSpec((tk, N), lambda k: (k, 0)),
            ],
            # Same output block across the reduction axis => resident in VMEM.
            out_specs=pl.BlockSpec((M, 4 * N), lambda k: (0, 0)),
            scratch_shapes=[pltpu.VMEM((M, N), jnp.float32)],
        ),
        compiler_params=pltpu.CompilerParams(
            dimension_semantics=("arbitrary",),
        ),
        cost_estimate=cost,
    )(x1, x2)


if __name__ == "__main__":
    # Original module uses x1: (3, 65067), x2: (65067, 5).  Keep the same
    # (M, K) x (K, N) structure at small K for the self-test.
    M, N = 3, 5
    key = jax.random.PRNGKey(0)
    k1, k2 = jax.random.split(key)

    # 1) Multi-step K grid with a remainder block (3 full 512-wide blocks +
    #    a 37-element tail) — exercises the masked partial-block path used by
    #    the production K = 65067.
    K = 3 * 512 + 37
    x1 = jax.random.normal(k1, (M, K), dtype=jnp.float32)
    x2 = jax.random.normal(k2, (K, N), dtype=jnp.float32)
    out = jax.block_until_ready(mm_cat4(x1, x2, tk=512))
    c = jnp.dot(x1, x2, precision=lax.Precision.HIGHEST)
    ref = jnp.concatenate([c, c, c, c], axis=1)
    assert out.shape == (M, 4 * N)
    assert jnp.allclose(out, ref, atol=1e-4, rtol=1e-4)

    # 2) Single full-extent block path (K <= tk), odd K.
    Ks = 97
    y1 = jax.random.normal(k1, (M, Ks), dtype=jnp.float32)
    y2 = jax.random.normal(k2, (Ks, N), dtype=jnp.float32)
    out2 = jax.block_until_ready(mm_cat4(y1, y2))
    c2 = jnp.dot(y1, y2, precision=lax.Precision.HIGHEST)
    ref2 = jnp.concatenate([c2, c2, c2, c2], axis=1)
    assert out2.shape == (M, 4 * N)
    assert jnp.allclose(out2, ref2, atol=1e-4, rtol=1e-4)

    print("KERNEL_OK")
</pallas_src>

<mosaic_0001>
module attributes {stable_mosaic.version = 11 : i64} {
  func.func @kernel(%arg0: i32, %arg1: memref<3x512xf32, #tpu.memory_space<vmem>>, %arg2: memref<512x5xf32, #tpu.memory_space<vmem>>, %arg3: memref<3x20xf32, #tpu.memory_space<vmem>>, %arg4: memref<3x5xf32, #tpu.memory_space<vmem>>) attributes {dimension_semantics = [#tpu.dimension_semantics<arbitrary>], iteration_bounds = array<i64: 4>, scalar_prefetch = 0 : i64, scratch_operands = 1 : i64, tpu.core_type = #tpu.core_type<tc>, window_params = [{transform_indices = @transform_0, window_bounds = array<i64: 3, 512>}, {transform_indices = @transform_1, window_bounds = array<i64: 512, 5>}, {pipeline_mode = #tpu.pipeline_mode<synchronous>, transform_indices = @transform_2, window_bounds = array<i64: 3, 20>}]} {
    %c0_i32 = arith.constant 0 : i32
    %0 = arith.cmpi eq, %arg0, %c0_i32 : i32
    %1 = arith.extui %0 : i1 to i32
    %c0_i32_0 = arith.constant 0 : i32
    %2 = arith.cmpi ne, %1, %c0_i32_0 : i32
    scf.if %2 {
      %cst = arith.constant 0.000000e+00 : f32
      %12 = vector.broadcast %cst : f32 to vector<3x5xf32>
      %c0 = arith.constant 0 : index
      %c0_6 = arith.constant 0 : index
      %13 = vector.load %arg4[%c0, %c0_6] : memref<3x5xf32, #tpu.memory_space<vmem>>, vector<3x5xf32>
      tpu.vector_store %arg4[%c0, %c0_6], %12 {strides = array<i32>} : memref<3x5xf32, #tpu.memory_space<vmem>>, vector<3x5xf32>,
    } else {
    }
    %c3_i32 = arith.constant 3 : i32
    %3 = arith.cmpi slt, %arg0, %c3_i32 : i32
    %4 = arith.extui %3 : i1 to i32
    %c0_i32_1 = arith.constant 0 : i32
    %5 = arith.cmpi ne, %4, %c0_i32_1 : i32
    scf.if %5 {
      %c0 = arith.constant 0 : index
      %c0_6 = arith.constant 0 : index
      %12 = vector.load %arg1[%c0, %c0_6] : memref<3x512xf32, #tpu.memory_space<vmem>>, vector<3x512xf32>
      %c0_7 = arith.constant 0 : index
      %c0_8 = arith.constant 0 : index
      %13 = vector.load %arg2[%c0_7, %c0_8] : memref<512x5xf32, #tpu.memory_space<vmem>>, vector<512x5xf32>
      %c0_9 = arith.constant 0 : index
      %c0_10 = arith.constant 0 : index
      %14 = vector.load %arg4[%c0_9, %c0_10] : memref<3x5xf32, #tpu.memory_space<vmem>>, vector<3x5xf32>
      %cst = arith.constant dense<0.000000e+00> : vector<3x5xf32>
      %15 = tpu.matmul %12, %13, %cst {dimension_numbers = #tpu.dot_dimension_numbers<[1], [0], [0], [1], [0, 0, 1, 1], [], []>, precision = #tpu.contract_precision<fp32>} : vector<3x512xf32>, vector<512x5xf32>, vector<3x5xf32> -> vector<3x5xf32>
      %16 = arith.addf %14, %15 : vector<3x5xf32>
      %c0_11 = arith.constant 0 : index
      %c0_12 = arith.constant 0 : index
      %17 = vector.load %arg4[%c0_11, %c0_12] : memref<3x5xf32, #tpu.memory_space<vmem>>, vector<3x5xf32>
      tpu.vector_store %arg4[%c0_11, %c0_12], %16 {strides = array<i32>} : memref<3x5xf32, #tpu.memory_space<vmem>>, vector<3x5xf32>,
    } else {
    }
    %c3_i32_2 = arith.constant 3 : i32
    %6 = arith.cmpi eq, %arg0, %c3_i32_2 : i32
    %7 = arith.extui %6 : i1 to i32
    %c0_i32_3 = arith.constant 0 : i32
    %8 = arith.cmpi ne, %7, %c0_i32_3 : i32
    scf.if %8 {
      %12 = tpu.iota {dimensions = array<i32: 1>} : vector<3x512xi32>
      %c37_i32 = arith.constant 37 : i32
      %13 = vector.broadcast %c37_i32 : i32 to vector<3x512xi32>
      %14 = arith.cmpi slt, %12, %13 : vector<3x512xi32>
      %c0 = arith.constant 0 : index
      %c0_6 = arith.constant 0 : index
      %15 = vector.load %arg1[%c0, %c0_6] : memref<3x512xf32, #tpu.memory_space<vmem>>, vector<3x512xf32>
      %cst = arith.constant 0.000000e+00 : f32
      %16 = vector.broadcast %cst : f32 to vector<3x512xf32>
      %17 = arith.select %14, %15, %16 : vector<3x512xi1>, vector<3x512xf32>
      %18 = tpu.iota {dimensions = array<i32: 0>} : vector<512x5xi32>
      %c37_i32_7 = arith.constant 37 : i32
      %19 = vector.broadcast %c37_i32_7 : i32 to vector<512x5xi32>
      %20 = arith.cmpi slt, %18, %19 : vector<512x5xi32>
      %c0_8 = arith.constant 0 : index
      %c0_9 = arith.constant 0 : index
      %21 = vector.load %arg2[%c0_8, %c0_9] : memref<512x5xf32, #tpu.memory_space<vmem>>, vector<512x5xf32>
      %cst_10 = arith.constant 0.000000e+00 : f32
      %22 = vector.broadcast %cst_10 : f32 to vector<512x5xf32>
      %23 = arith.select %20, %21, %22 : vector<512x5xi1>, vector<512x5xf32>
      %c0_11 = arith.constant 0 : index
      %c0_12 = arith.constant 0 : index
      %24 = vector.load %arg4[%c0_11, %c0_12] : memref<3x5xf32, #tpu.memory_space<vmem>>, vector<3x5xf32>
      %cst_13 = arith.constant dense<0.000000e+00> : vector<3x5xf32>
      %25 = tpu.matmul %17, %23, %cst_13 {dimension_numbers = #tpu.dot_dimension_numbers<[1], [0], [0], [1], [0, 0, 1, 1], [], []>, precision = #tpu.contract_precision<fp32>} : vector<3x512xf32>, vector<512x5xf32>, vector<3x5xf32> -> vector<3x5xf32>
      %26 = arith.addf %24, %25 : vector<3x5xf32>
      %c0_14 = arith.constant 0 : index
      %c0_15 = arith.constant 0 : index
      %27 = vector.load %arg4[%c0_14, %c0_15] : memref<3x5xf32, #tpu.memory_space<vmem>>, vector<3x5xf32>
      tpu.vector_store %arg4[%c0_14, %c0_15], %26 {strides = array<i32>} : memref<3x5xf32, #tpu.memory_space<vmem>>, vector<3x5xf32>,
    } else {
    }
    %c3_i32_4 = arith.constant 3 : i32
    %9 = arith.cmpi eq, %arg0, %c3_i32_4 : i32
    %10 = arith.extui %9 : i1 to i32
    %c0_i32_5 = arith.constant 0 : i32
    %11 = arith.cmpi ne, %10, %c0_i32_5 : i32
    scf.if %11 {
      %c0 = arith.constant 0 : index
      %c0_6 = arith.constant 0 : index
      %12 = vector.load %arg4[%c0, %c0_6] : memref<3x5xf32, #tpu.memory_space<vmem>>, vector<3x5xf32>
      %13 = tpu.concatenate %12, %12, %12, %12 in 1 : vector<3x5xf32>, vector<3x5xf32>, vector<3x5xf32>, vector<3x5xf32> -> vector<3x20xf32>
      %c0_7 = arith.constant 0 : index
      %c0_8 = arith.constant 0 : index
      %14 = vector.load %arg3[%c0_7, %c0_8] : memref<3x20xf32, #tpu.memory_space<vmem>>, vector<3x20xf32>
      tpu.vector_store %arg3[%c0_7, %c0_8], %13 {strides = array<i32>} : memref<3x20xf32, #tpu.memory_space<vmem>>, vector<3x20xf32>,
    } else {
    }
    return
  }
  func.func @transform_0(%arg0: i32) -> (i32, i32) {
    %c0_i32 = arith.constant 0 : i32
    %c0_i32_0 = arith.constant 0 : i32
    return %c0_i32, %arg0 : i32, i32
  }
  func.func @transform_1(%arg0: i32) -> (i32, i32) {
    %c0_i32 = arith.constant 0 : i32
    %c0_i32_0 = arith.constant 0 : i32
    return %arg0, %c0_i32 : i32, i32
  }
  func.func @transform_2(%arg0: i32) -> (i32, i32) {
    %c0_i32 = arith.constant 0 : i32
    %c0_i32_0 = arith.constant 0 : i32
    %c0_i32_1 = arith.constant 0 : i32
    return %c0_i32, %c0_i32_0 : i32, i32
  }
}

</mosaic_0001>

<bundles_post_ra>
// kernel: tpu_custom_call.1
= control target key start
LH: loop header
LB: loop body
LE: loop exit
PB: predicated region body
PF: predicated region fallthrough
CT: control target
= control target key end

     0   :  { %7 = vsyncpa [#allocation4], 0  ;;  %s5187_s9 = smov 0   ;;  %s6303_s0 = inlined_call_operand.vmem [shape: f32[3,1573], index: 0, kind: input, shape index: {}]   ;;  %s6304_s1 = inlined_call_operand.vmem [shape: f32[1573,5], index: 1, kind: input, shape index: {}]   ;;  %s6305_s2 = inlined_call_operand.hbm [shape: f32[3,20], index: 2, kind: output, shape index: {}]  }
   0x1 LB: > { %s5193_s10 = sadd.s32 4294967295, %s5162_s9   ;;  %p4094_p0 = scmp.ge.s32.totalorder %s5162_s9, 1  ;;  %s5162_s9 = sphi %s5187_s9, %s13_s9  }
   0x2   : > { %p136_p1 = scmp.lt.s32.totalorder %s5162_s9, 5 }
   0x4   : > { %p137_p2 = pnand %p4094_p0, %p136_p1 }
   0x5   : > { %s4095_s11 = sshll.u32 (!%p137_p2), %s5193_s10, 2  ;;  %s4097_s12 = sshll.u32 (!%p137_p2), %s5193_s10, 6 }
   0x6   : > { %140 = sbr.rel (%p137_p2) target bundleno = 898 (0x382), region = 28  ;;  %p171_p3 = scmp.lt.s32.totalorder (!%p137_p2), %s4095_s11, 12 }
   0x7   : > { %p185_p4 = scmp.lt.s32.totalorder (!%p137_p2), %s4097_s12, 196  ;;  %p4099_p5 = scmp.ne.s32.totalorder (!%p137_p2), %s5193_s10, 0 }
   0xd   : > { %s6521_s11 = smov (!%p171_p3, %s4095_s11), 12  ;;  %s6523_s12 = smov (!%p185_p4, %s4097_s12), 196 }
   0xe   : > { %s4096_s13 = sshll.u32 %s6521_s11, 2  ;;  %s4098_s17 = sshll.u32 %s6523_s12, 3  ;;  %vm198_vm0 = vcmask (!%p4099_p5), 34816   ;;  %v5164_v0 = vmov (!%p4099_p5), 0.0  }
   0xf   : > { %s5202_s16 = scalar_lea.vmem %s6303_s0, %s4096_s13  ;;  %s5207_s20 = scalar_lea.vmem %s6304_s1, %s4098_s17  ;;  %199 = vst.msk [vmem:[#allocation2] sm:$0x7] (!%p4099_p5), %vm198_vm0, %v5164_v0 }
  0x10   : > { %197 = sbr.rel (%p4099_p5) target bundleno = 23 (0x17), region = 32 }
  0x17 PF: > { %p4100_p6 = scmp.ge.s32.totalorder %s5193_s10, 3 }
  0x19   : > { %203 = sbr.rel (%p4100_p6) target bundleno = 472 (0x1d8), region = 36 }
  0x20   : > { %v222_v1 = vld [vmem:[%s5207_s20 + $0x80] sm:$0xff]  ;;  %v223_v2 = vld [vmem:[%s5207_s20 + $0x88] sm:$0xff]  ;;  %v224_v8 = vld [vmem:[%s5207_s20 + $0x90] sm:$0xff]  ;;  %vm2002_vm1 = vcmask 34816  }
  0x21   : > { %v206_v3 = vld [vmem:[%s5207_s20] sm:$0xff]  ;;  %v326_v4 = vand.u32 4294901760, %v222_v1  ;;  %v329_v5 = vand.u32 4294901760, %v223_v2  ;;  %v207_v6 = vld [vmem:[%s5207_s20 + $0x8] sm:$0xff]  ;;  %v225_v9 = vld [vmem:[%s5207_s20 + $0x98] sm:$0xff]  ;;  %v332_v11 = vand.u32 4294901760, %v224_v8 }
  0x22   : > { %v278_v7 = vand.u32 4294901760, %v206_v3  ;;  %v281_v10 = vand.u32 4294901760, %v207_v6  ;;  %v335_v12 = vand.u32 4294901760, %v225_v9  ;;  %v208_v13 = vld [vmem:[%s5207_s20 + $0x10] sm:$0xff]  ;;  %v209_v14 = vld [vmem:[%s5207_s20 + $0x18] sm:$0xff]  ;;  %v226_v19 = vld [vmem:[%s5207_s20 + $0xa0] sm:$0xff] }
  0x23   : > { %v5219_v15 = vpack.c.bf16 %v329_v5, %v326_v4  ;;  %v284_v17 = vand.u32 4294901760, %v208_v13  ;;  %v287_v18 = vand.u32 4294901760, %v209_v14  ;;  %v227_v20 = vld [vmem:[%s5207_s20 + $0xa8] sm:$0xff]  ;;  %v210_v24 = vld [vmem:[%s5207_s20 + $0x20] sm:$0xff]  ;;  %v5234_v26 = vsub.f32 %v224_v8, %v332_v11  ;;  %v228_v38 = vld [vmem:[%s5207_s20 + $0xb0] sm:$0xff] }
  0x24   : > { %v5221_v16 = vsub.f32 %v206_v3, %v278_v7  ;;  %v5225_v21 = vpack.c.bf16 %v281_v10, %v278_v7  ;;  %v5227_v22 = vsub.f32 %v207_v6, %v281_v10  ;;  %v5229_v23 = vpack.c.bf16 %v335_v12, %v332_v11  ;;  %v211_v25 = vld [vmem:[%s5207_s20 + $0x28] sm:$0xff]  ;;  %v229_v43 = vld [vmem:[%s5207_s20 + $0xb8] sm:$0xff]  ;;  %v212_v56 = vld [vmem:[%s5207_s20 + $0x30] sm:$0xff] }
  0x25   : > { %4683 = vmatprep.subr.bf16.mxu0 %v5219_v15  ;;  %v5236_v27 = vsub.f32 %v225_v9, %v335_v12  ;;  %v5238_v28 = vpack.c.bf16 %v287_v18, %v284_v17  ;;  %v5240_v29 = vsub.f32 %v208_v13, %v284_v17  ;;  %v338_v30 = vand.u32 4294901760, %v226_v19  ;;  %v213_v57 = vld [vmem:[%s5207_s20 + $0x38] sm:$0xff]  ;;  %v230_v6 = vld [vmem:[%s5207_s20 + $0xc0] sm:$0xff]  ;;  %v231_v7 = vld [vmem:[%s5207_s20 + $0xc8] sm:$0xff] }
  0x26   : > { %4685 = vmatpush3.bf16.msra.mxu0 %v5225_v21  ;;  %v341_v31 = vand.u32 4294901760, %v227_v20  ;;  %v5243_v32 = vsub.f32 %v222_v1, %v326_v4  ;;  %v5245_v33 = vsub.f32 %v223_v2, %v329_v5  ;;  %v290_v34 = vand.u32 4294901760, %v210_v24  ;;  %v214_v12 = vld [vmem:[%s5207_s20 + $0x40] sm:$0xff] }
  0x27   : > { %4687 = vmatprep.subr.bf16.mxu0 %v5229_v23  ;;  %v293_v35 = vand.u32 4294901760, %v211_v25  ;;  %v6322_v36 = vand.u32 4294901760, %v5221_v16  ;;  %v6320_v37 = vand.u32 4294901760, %v5227_v22  ;;  %v5251_v39 = vsub.f32 %v209_v14, %v287_v18 }
  0x28   : > { %v5253_v40 = vpack.c.bf16 %v341_v31, %v338_v30  ;;  %v5255_v41 = vsub.f32 %v226_v19, %v338_v30  ;;  %v6325_v42 = vand.u32 4294901760, %v5243_v32  ;;  %v5259_v44 = vsub.f32 %v227_v20, %v341_v31  ;;  %v215_v30 = vld [vmem:[%s5207_s20 + $0x48] sm:$0xff] }
  0x29   : > { %v6324_v45 = vand.u32 4294901760, %v5245_v33  ;;  %v5262_v46 = vpack.c.bf16 %v293_v35, %v290_v34  ;;  %v5264_v47 = vsub.f32 %v210_v24, %v290_v34  ;;  %v393_v49 = vsub.f32 %v5221_v16, %v6322_v36 }
  0x2a   : > { %4689 = vmatpush3.bf16.msra.mxu0 %v5238_v28  ;;  %v505_v48 = vsub.f32 %v5243_v32, %v6325_v42  ;;  %v400_v50 = vsub.f32 %v5227_v22, %v6320_v37  ;;  %v344_v51 = vand.u32 4294901760, %v228_v38  ;;  %v347_v53 = vand.u32 4294901760, %v229_v43  ;;  %v204_v42 = vld [vmem:[%s5202_s16] sm:$0x77] }
  0x2b   : > { %4691 = vmatprep.subr.bf16.mxu0 %v5253_v40  ;;  %v512_v52 = vsub.f32 %v5245_v33, %v6324_v45  ;;  %v6318_v54 = vand.u32 4294901760, %v5234_v26  ;;  %v6317_v55 = vand.u32 4294901760, %v5236_v27  ;;  %v5284_v59 = vsub.f32 %v211_v25, %v293_v35 }
  0x2c   : > { %v506_v58 = vand.u32 4294901760, %v505_v48  ;;  %v394_v60 = vand.u32 4294901760, %v393_v49  ;;  %v401_v61 = vand.u32 4294901760, %v400_v50  ;;  %v5286_v63 = vpack.c.bf16 %v347_v53, %v344_v51 }
  0x2d   : > { %v513_v62 = vand.u32 4294901760, %v512_v52  ;;  %v5288_v0 = vsub.f32 %v228_v38, %v344_v51  ;;  %v519_v1 = vsub.f32 %v5234_v26, %v6318_v54  ;;  %v526_v3 = vsub.f32 %v5236_v27, %v6317_v55 }
  0x2e   : > { %4693 = vmatpush3.bf16.msra.mxu0 %v5262_v46  ;;  %v4716_v2 = vpack.c.bf16 %v401_v61, %v394_v60  ;;  %v296_v4 = vand.u32 4294901760, %v212_v56  ;;  %v299_v5 = vand.u32 4294901760, %v213_v57  ;;  %v6315_v10 = vand.u32 4294901760, %v5240_v29 }
  0x2f   : > { %v4714_v8 = vpack.c.bf16 %v513_v62, %v506_v58  ;;  %4695 = vmatprep.subr.bf16.mxu0 %v5286_v63  ;;  %v520_v9 = vand.u32 4294901760, %v519_v1  ;;  %v6314_v11 = vand.u32 4294901760, %v5251_v39  ;;  %v5303_v13 = vsub.f32 %v229_v43, %v347_v53  ;;  %v232_v58 = vld [vmem:[%s5207_s20 + $0xd0] sm:$0xff] }
  0x30   : > { %v527_v14 = vand.u32 4294901760, %v526_v3  ;;  %v5305_v17 = vpack.c.bf16 %v299_v5, %v296_v4  ;;  %v5307_v18 = vsub.f32 %v212_v56, %v296_v4  ;;  %v407_v19 = vsub.f32 %v5240_v29, %v6315_v10  ;;  %v236_v10 = vld [vmem:[%s5207_s20 + $0xf0] sm:$0xff] }
  0x31   : > { %4715 = vmatprep.subr.bf16.mxu1 %v4714_v8  ;;  %v414_v20 = vsub.f32 %v5251_v39, %v6314_v11  ;;  %v350_v24 = vand.u32 4294901760, %v230_v6  ;;  %v353_v25 = vand.u32 4294901760, %v231_v7  ;;  %v6312_v34 = vand.u32 4294901760, %v5255_v41 }
  0x32   : > { %4717 = vmatpush3.bf16.msra.mxu1 %v4716_v2  ;;  %v4718_v31 = vpack.c.bf16 %v527_v14, %v520_v9  ;;  %4697 = vmatpush3.bf16.msra.mxu0 %v5305_v17  ;;  %v6311_v35 = vand.u32 4294901760, %v5259_v44  ;;  %v302_v38 = vand.u32 4294901760, %v214_v12  ;;  %v5319_v43 = vsub.f32 %v213_v57, %v299_v5  ;;  %v233_v57 = vld [vmem:[%s5207_s20 + $0xd8] sm:$0xff]  ;;  %v216_v2 = vld [vmem:[%s5207_s20 + $0x50] sm:$0xff] }
  0x33   : > { %v408_v48 = vand.u32 4294901760, %v407_v19  ;;  %v415_v49 = vand.u32 4294901760, %v414_v20  ;;  %v5321_v50 = vpack.c.bf16 %v353_v25, %v350_v24  ;;  %v5323_v51 = vsub.f32 %v230_v6, %v350_v24  ;;  %v217_v19 = vld [vmem:[%s5207_s20 + $0x58] sm:$0xff] }
  0x34   : > { %4719 = vmatprep.subr.bf16.mxu1 %v4718_v31  ;;  %v533_v52 = vsub.f32 %v5255_v41, %v6312_v34  ;;  %v540_v53 = vsub.f32 %v5259_v44, %v6311_v35  ;;  %v305_v56 = vand.u32 4294901760, %v215_v30  ;;  %v5334_v61 = vsub.f32 %v231_v7, %v353_v25 }
  0x35   : > { %v4720_v60 = vpack.c.bf16 %v415_v49, %v408_v48  ;;  %4699 = vmatprep.subr.bf16.mxu0 %v5321_v50  ;;  %v6308_v62 = vand.u32 4294901760, %v5264_v47  ;;  %v6307_v1 = vand.u32 4294901760, %v5284_v59  ;;  %v5341_v6 = vsub.f32 %v214_v12, %v302_v38 }
  0x36   : > { %v534_v3 = vand.u32 4294901760, %v533_v52  ;;  %v541_v4 = vand.u32 4294901760, %v540_v53  ;;  %v5339_v5 = vpack.c.bf16 %v305_v56, %v302_v38  ;;  %v356_v9 = vand.u32 4294901760, %v232_v58 }
  0x37   : > { %4721 = vmatpush3.bf16.msra.mxu1 %v4720_v60  ;;  %v421_v8 = vsub.f32 %v5264_v47, %v6308_v62  ;;  %v428_v7 = vsub.f32 %v5284_v59, %v6307_v1  ;;  %v359_v14 = vand.u32 4294901760, %v233_v57  ;;  %v6306_v12 = vand.u32 4294901760, %v5288_v0 }
  0x38   : > { %v4722_v20 = vpack.c.bf16 %v541_v4, %v534_v3  ;;  %4701 = vmatpush3.bf16.msra.mxu0 %v5339_v5  ;;  %v6309_v24 = vand.u32 4294901760, %v5303_v13  ;;  %v308_v25 = vand.u32 4294901760, %v216_v2  ;;  %v5353_v31 = vsub.f32 %v215_v30, %v305_v56  ;;  %v234_v4 = vld [vmem:[%s5207_s20 + $0xe0] sm:$0xff]  ;;  %v235_v30 = vld [vmem:[%s5207_s20 + $0xe8] sm:$0xff] }
  0x39   : > { %v422_v38 = vand.u32 4294901760, %v421_v8  ;;  %v429_v48 = vand.u32 4294901760, %v428_v7  ;;  %v5355_v49 = vpack.c.bf16 %v359_v14, %v356_v9  ;;  %v5357_v52 = vsub.f32 %v232_v58, %v356_v9  ;;  %v218_v9 = vld [vmem:[%s5207_s20 + $0x60] sm:$0xff] }
  0x3a   : > { %4723 = vmatprep.subr.bf16.mxu1 %v4722_v20  ;;  %v547_v53 = vsub.f32 %v5288_v0, %v6306_v12  ;;  %v554_v60 = vsub.f32 %v5303_v13, %v6309_v24  ;;  %v311_v3 = vand.u32 4294901760, %v217_v19  ;;  %v5368_v8 = vsub.f32 %v233_v57, %v359_v14  ;;  %v219_v24 = vld [vmem:[%s5207_s20 + $0x68] sm:$0xff] }
  0x3b   : > { %v4724_v56 = vpack.c.bf16 %v429_v48, %v422_v38  ;;  %4703 = vmatprep.subr.bf16.mxu0 %v5355_v49  ;;  %v6310_v58 = vand.u32 4294901760, %v5307_v18  ;;  %v6313_v7 = vand.u32 4294901760, %v5319_v43  ;;  %v5375_v62 = vsub.f32 %v216_v2, %v308_v25 }
  0x3c   : > { %v548_v20 = vand.u32 4294901760, %v547_v53  ;;  %v555_v12 = vand.u32 4294901760, %v554_v60  ;;  %v5373_v1 = vpack.c.bf16 %v311_v3, %v308_v25  ;;  %v362_v14 = vand.u32 4294901760, %v234_v4 }
  0x3d   : > { %4725 = vmatpush3.bf16.msra.mxu1 %v4724_v56  ;;  %v435_v38 = vsub.f32 %v5307_v18, %v6310_v58  ;;  %v442_v57 = vsub.f32 %v5319_v43, %v6313_v7  ;;  %v365_v48 = vand.u32 4294901760, %v235_v30  ;;  %v6316_v2 = vand.u32 4294901760, %v5323_v51 }
  0x3e   : > { %v4726_v53 = vpack.c.bf16 %v555_v12, %v548_v20  ;;  %4705 = vmatpush3.bf16.msra.mxu0 %v5373_v1  ;;  %v6319_v25 = vand.u32 4294901760, %v5334_v61  ;;  %v314_v60 = vand.u32 4294901760, %v218_v9  ;;  %v5387_v56 = vsub.f32 %v217_v19, %v311_v3  ;;  %v237_v19 = vld [vmem:[%s5207_s20 + $0xf8] sm:$0xff] }
  0x3f   : > { %v436_v58 = vand.u32 4294901760, %v435_v38  ;;  %v443_v35 = vand.u32 4294901760, %v442_v57  ;;  %v5389_v34 = vpack.c.bf16 %v365_v48, %v362_v14  ;;  %v5391_v7 = vsub.f32 %v234_v4, %v362_v14  ;;  %v220_v14 = vld [vmem:[%s5207_s20 + $0x70] sm:$0xff] }
  0x40   : > { %4727 = vmatprep.subr.bf16.mxu1 %v4726_v53  ;;  %v561_v12 = vsub.f32 %v5323_v51, %v6316_v2  ;;  %v568_v20 = vsub.f32 %v5334_v61, %v6319_v25  ;;  %v317_v11 = vand.u32 4294901760, %v219_v24  ;;  %v5402_v38 = vsub.f32 %v235_v30, %v365_v48  ;;  %v221_v25 = vld [vmem:[%s5207_s20 + $0x78] sm:$0xff] }
  0x41   : > { %6395 = vst [vmem:[#allocation6_spill] sm:$0xff] %v5389_v34  ;;  %v4728_v3 = vpack.c.bf16 %v443_v35, %v436_v58  ;;  %4707 = vmatprep.subr.bf16.mxu0 %v5389_v34  ;;  %v6321_v4 = vand.u32 4294901760, %v5341_v6  ;;  %v6323_v57 = vand.u32 4294901760, %v5353_v31  ;;  %v5409_v54 = vsub.f32 %v218_v9, %v314_v60 }
  0x42   : > { %v562_v53 = vand.u32 4294901760, %v561_v12  ;;  %v569_v2 = vand.u32 4294901760, %v568_v20  ;;  %v5407_v55 = vpack.c.bf16 %v317_v11, %v314_v60  ;;  %v368_v58 = vand.u32 4294901760, %v236_v10 }
  0x43   : > { %4729 = vmatpush3.bf16.msra.mxu1 %v4728_v3  ;;  %v449_v35 = vsub.f32 %v5341_v6, %v6321_v4  ;;  %v456_v30 = vsub.f32 %v5353_v31, %v6323_v57  ;;  %v371_v48 = vand.u32 4294901760, %v237_v19  ;;  %v6330_v12 = vand.u32 4294901760, %v5357_v52 }
  0x44   : > { %6396 = vst [vmem:[#allocation7_spill] sm:$0xff] %v5407_v55  ;;  %v4730_v37 = vpack.c.bf16 %v569_v2, %v562_v53  ;;  %4709 = vmatpush3.bf16.msra.mxu0 %v5407_v55  ;;  %v6328_v9 = vand.u32 4294901760, %v5368_v8  ;;  %v320_v60 = vand.u32 4294901760, %v220_v14  ;;  %v5421_v20 = vsub.f32 %v219_v24, %v317_v11 }
  0x45   : > { %v450_v3 = vand.u32 4294901760, %v449_v35  ;;  %v457_v4 = vand.u32 4294901760, %v456_v30  ;;  %v5423_v36 = vpack.c.bf16 %v371_v48, %v368_v58  ;;  %v5425_v57 = vsub.f32 %v236_v10, %v368_v58 }
  0x46   : > { %4731 = vmatprep.subr.bf16.mxu1 %v4730_v37  ;;  %v575_v2 = vsub.f32 %v5357_v52, %v6330_v12  ;;  %v582_v53 = vsub.f32 %v5368_v8, %v6328_v9  ;;  %v323_v45 = vand.u32 4294901760, %v221_v25  ;;  %v5435_v11 = vsub.f32 %v237_v19, %v371_v48 }
  0x47   : > { %6397 = vst [vmem:[#allocation8_spill] sm:$0xff] %v5423_v36  ;;  %v4732_v55 = vpack.c.bf16 %v457_v4, %v450_v3  ;;  %4711 = vmatprep.subr.bf16.mxu0 %v5423_v36  ;;  %v6329_v24 = vand.u32 4294901760, %v5375_v62  ;;  %v6331_v37 = vand.u32 4294901760, %v5387_v56  ;;  %v5441_v58 = vsub.f32 %v220_v14, %v320_v60 }
  0x48   : > { %v576_v10 = vand.u32 4294901760, %v575_v2  ;;  %v583_v35 = vand.u32 4294901760, %v582_v53  ;;  %v5439_v30 = vpack.c.bf16 %v323_v45, %v320_v60  ;;  %v273_v4 = vcombine.high %v204_v42, %v204_v42 }
  0x49   : > { %4733 = vmatpush3.bf16.msra.mxu1 %v4732_v55  ;;  %v463_v9 = vsub.f32 %v5375_v62, %v6329_v24  ;;  %v470_v19 = vsub.f32 %v5387_v56, %v6331_v37  ;;  %v5449_v48 = vand.u32 4294901760, %v204_v42  ;;  %v6334_v2 = vand.u32 4294901760, %v5391_v7 }
  0x4a   : > { %6398 = vst [vmem:[#allocation9_spill] sm:$0xff] %v5439_v30  ;;  %v4734_v3 = vpack.c.bf16 %v583_v35, %v576_v10  ;;  %4713 = vmatpush3.bf16.msra.mxu0 %v5439_v30  ;;  %v6337_v14 = vand.u32 4294901760, %v5402_v38  ;;  %v4746_v55 = vpack.c.bf16 %v5245_v33, %v5243_v32  ;;  %v5456_v24 = vand.u32 4294901760, %v273_v4 }
  0x4b   : > { %v464_v60 = vand.u32 4294901760, %v463_v9  ;;  %v471_v53 = vand.u32 4294901760, %v470_v19  ;;  %v5459_v12 = vsub.f32 %v204_v42, %v5449_v48  ;;  %v589_v10 = vsub.f32 %v5391_v7, %v6334_v2 }
  0x4c   : > { %6399 = vst [vmem:[#allocation10_spill] sm:$0xff] %v5456_v24  ;;  %4735 = vmatprep.subr.bf16.mxu1 %v4734_v3  ;;  %v596_v35 = vsub.f32 %v5402_v38, %v6337_v14  ;;  %4747 = vmatprep.subr.bf16.mxu0 %v4746_v55  ;;  %v6338_v37 = vand.u32 4294901760, %v5409_v54  ;;  %v6339_v9 = vand.u32 4294901760, %v5421_v20  ;;  %v5469_v19 = vsub.f32 %v221_v25, %v323_v45 }
  0x4d   : > { %6400 = vst [vmem:[#allocation11_spill] sm:$0xff] %v5459_v12  ;;  %v4736_v30 = vpack.c.bf16 %v471_v53, %v464_v60  ;;  %v5472_v42 = vsub.f32 %v273_v4, %v5456_v24  ;;  %v6342_v3 = vand.u32 4294901760, %v5459_v12  ;;  %614 = vmatprep.mubr.f32.mxu1 %v5456_v24  ;;  %v590_v2 = vand.u32 4294901760, %v589_v10 }
  0x4e   : > { %v597_v36 = vand.u32 4294901760, %v596_v35  ;;  %v477_v55 = vsub.f32 %v5409_v54, %v6338_v37  ;;  %v484_v14 = vsub.f32 %v5421_v20, %v6339_v9  ;;  %v6347_v4 = vand.u32 4294901760, %v5425_v57 }
  0x4f   : > { %4737 = vmatpush3.bf16.msra.mxu1 %v4736_v30  ;;  %v375_v45 = vand.u32 4294901760, %v5472_v42  ;;  %v382_v25 = vsub.f32 %v5459_v12, %v6342_v3  ;;  %v609_v60 = vand.u32 4294901760, %v5435_v11  ;;  %v6348_v12 = vand.u32 4294901760, %v5441_v58 }
  0x50   : > { %v4738_v53 = vpack.c.bf16 %v597_v36, %v590_v2  ;;  %v478_v10 = vand.u32 4294901760, %v477_v55  ;;  %v485_v35 = vand.u32 4294901760, %v484_v14  ;;  %v603_v9 = vsub.f32 %v5425_v57, %v6347_v4 }
  0x51   : > { %v376_v37 = vsub.f32 %v5472_v42, %v375_v45  ;;  %v610_v30 = vsub.f32 %v5435_v11, %v609_v60  ;;  %v383_v24 = vand.u32 4294901760, %v382_v25  ;;  %v497_v34 = vand.u32 4294901760, %v5469_v19 }
  0x52   : > { %4739 = vmatprep.subr.bf16.mxu1 %v4738_v53  ;;  %v4740_v3 = vpack.c.bf16 %v485_v35, %v478_v10  ;;  %v4748_v2 = vpack.c.bf16 %v5227_v22, %v5221_v16  ;;  %v604_v14 = vand.u32 4294901760, %v603_v9  ;;  %v4750_v4 = vpack.c.bf16 %v5236_v27, %v5234_v26 }
  0x53   : > { %v377_v36 = vand.u32 4294901760, %v376_v37  ;;  %v611_v55 = vand.u32 4294901760, %v610_v30  ;;  %v491_v53 = vsub.f32 %v5441_v58, %v6348_v12  ;;  %v498_v25 = vsub.f32 %v5469_v19, %v497_v34 }
  0x54   : > { %4741 = vmatpush3.bf16.msra.mxu1 %v4740_v3  ;;  %v4752_v9 = vpack.c.bf16 %v5251_v39, %v5240_v29  ;;  %v4754_v3 = vpack.c.bf16 %v5259_v44, %v5255_v41  ;;  %v4756_v12 = vpack.c.bf16 %v5284_v59, %v5264_v47 }
  0x55   : > { %378 = vmatprep.mubr.f32.mxu0 %v377_v36  ;;  %v4742_v10 = vpack.c.bf16 %v611_v55, %v604_v14  ;;  %v492_v37 = vand.u32 4294901760, %v491_v53  ;;  %v499_v35 = vand.u32 4294901760, %v498_v25  ;;  %v6401_v36 = vand.u32 4294901760, %v5243_v32 }
  0x56   : > { %384 = vmatmul.mubr.f32.vlgmr.msra.gmra.mrb[0].mxu0 %v383_v24  ;;  %v6402_v24 = vand.u32 4294901760, %v5245_v33  ;;  %v6404_v55 = vand.u32 4294901760, %v5227_v22  ;;  %v6405_v25 = vand.u32 4294901760, %v5234_v26  ;;  %v6409_v32 = vand.u32 4294901760, %v5255_v41 }
  0x57   : > { %4749 = vmatpush3.bf16.msra.mxu0 %v4748_v2  ;;  %4743 = vmatprep.subr.bf16.mxu1 %v4742_v10  ;;  %v4744_v30 = vpack.c.bf16 %v499_v35, %v492_v37  ;;  %v6403_v2 = vand.u32 4294901760, %v5221_v16  ;;  %v6407_v37 = vand.u32 4294901760, %v5240_v29  ;;  %v6408_v35 = vand.u32 4294901760, %v5251_v39 }
  0x58   : > { %4751 = vmatprep.subr.bf16.mxu0 %v4750_v4  ;;  %751 = vmatprep.mubr.f32.mxu0 %v5472_v42  ;;  %v4810_v14 = vpack.c.bf16 %v6402_v24, %v6401_v36  ;;  %v6406_v4 = vand.u32 4294901760, %v5236_v27  ;;  %v6410_v33 = vand.u32 4294901760, %v5259_v44  ;;  %v6411_v16 = vand.u32 4294901760, %v5264_v47 }
  0x59   : > { %v4812_v53 = vpack.c.bf16 %v6404_v55, %v6403_v2  ;;  %v5530_v42 = vpack.c.bf16 %v6408_v35, %v6407_v37  ;;  %4745 = vmatpush3.bf16.msra.mxu1 %v4744_v30  ;;  %v6412_v22 = vand.u32 4294901760, %v5284_v59  ;;  %v6413_v27 = vand.u32 4294901760, %v5288_v0 }
  0x5a   : > { %v4814_v10 = vpack.c.bf16 %v6406_v4, %v6405_v25  ;;  %v5536_v36 = vpack.c.bf16 %v6410_v33, %v6409_v32  ;;  %v6414_v29 = vand.u32 4294901760, %v5303_v13  ;;  %v6415_v24 = vand.u32 4294901760, %v5307_v18  ;;  %4779 = vmatprep.subr.bf16.mxu1 %v5219_v15 }
  0x5b   : > { %v5542_v26 = vpack.c.bf16 %v6412_v22, %v6411_v16  ;;  %v6416_v41 = vand.u32 4294901760, %v5319_v43  ;;  %v6417_v30 = vand.u32 4294901760, %v5323_v51  ;;  %v6418_v47 = vand.u32 4294901760, %v5334_v61  ;;  %4753 = vmatpush3.bf16.msra.mxu0 %v4752_v9 }
  0x5c   : > { %v5548_v39 = vpack.c.bf16 %v6414_v29, %v6413_v27  ;;  %v6419_v59 = vand.u32 4294901760, %v5341_v6  ;;  %v6420_v55 = vand.u32 4294901760, %v5353_v31  ;;  %v6421_v4 = vand.u32 4294901760, %v5357_v52  ;;  %4755 = vmatprep.subr.bf16.mxu0 %v4754_v3  ;;  %616 = vmatmul.mubr.f32.vlgmr.msra.gmra.mrb[0].mxu1 %v5449_v48 }
  0x5d   : > { %v5554_v44 = vpack.c.bf16 %v6416_v41, %v6415_v24  ;;  %v5560_v2 = vpack.c.bf16 %v6418_v47, %v6417_v30  ;;  %v6422_v37 = vand.u32 4294901760, %v5368_v8  ;;  %v6423_v32 = vand.u32 4294901760, %v5375_v62  ;;  %4781 = vmatpush3.bf16.msra.mxu1 %v5225_v21  ;;  %858 = vmatprep.mubr.f32.mxu1 %v375_v45  ;;  %v6430_v45 = vld [vmem:[#allocation8_spill] sm:$0xff]  ;;  %v6431_v30 = vld [vmem:[#allocation10_spill] sm:$0xff] }
  0x5e   : > { %v5567_v25 = vpack.c.bf16 %v6420_v55, %v6419_v59  ;;  %v6424_v33 = vand.u32 4294901760, %v5387_v56  ;;  %v4758_v9 = vpack.c.bf16 %v5303_v13, %v5288_v0  ;;  %v6425_v22 = vand.u32 4294901760, %v5409_v54  ;;  %4783 = vmatprep.subr.bf16.mxu1 %v5229_v23  ;;  %v6432_v59 = vld [vmem:[#allocation9_spill] sm:$0xff]  ;;  %v256_v55 = vld [vmem:[%s5207_s20 + $0x190] sm:$0xff] }
  0x5f   : > { %v5573_v35 = vpack.c.bf16 %v6422_v37, %v6421_v4  ;;  %v6426_v27 = vand.u32 4294901760, %v5421_v20  ;;  %4757 = vmatpush3.bf16.msra.mxu0 %v4756_v12  ;;  %v4760_v3 = vpack.c.bf16 %v5319_v43, %v5307_v18  ;;  %v4762_v0 = vpack.c.bf16 %v5334_v61, %v5323_v51  ;;  %v257_v37 = vld [vmem:[%s5207_s20 + $0x198] sm:$0xff] }
  0x60   : > { %v5579_v16 = vpack.c.bf16 %v6424_v33, %v6423_v32  ;;  %4759 = vmatprep.subr.bf16.mxu0 %v4758_v9  ;;  %v4764_v13 = vpack.c.bf16 %v5353_v31, %v5341_v6  ;;  %v4766_v12 = vpack.c.bf16 %v5368_v8, %v5357_v52  ;;  %v4768_v18 = vpack.c.bf16 %v5387_v56, %v5375_v62  ;;  %v6427_v6 = vld [vmem:[#allocation6_spill] sm:$0xff]  ;;  %v6428_v52 = vld [vmem:[#allocation11_spill] sm:$0xff]  ;;  %v238_v56 = vld [vmem:[%s5207_s20 + $0x100] sm:$0xff] }
  0x61   : > { %v5587_v29 = vpack.c.bf16 %v6426_v27, %v6425_v22  ;;  %4785 = vmatpush3.bf16.msra.mxu1 %v5238_v28  ;;  %v4770_v43 = vpack.c.bf16 %v5402_v38, %v5391_v7  ;;  %v4772_v51 = vpack.c.bf16 %v5421_v20, %v5409_v54  ;;  %v4774_v61 = vpack.c.bf16 %v5435_v11, %v5425_v57  ;;  %v254_v54 = vld [vmem:[%s5207_s20 + $0x180] sm:$0xff]  ;;  %v255_v31 = vld [vmem:[%s5207_s20 + $0x188] sm:$0xff]  ;;  %v6429_v8 = vld [vmem:[#allocation7_spill] sm:$0xff] }
  0x62   : > { %4787 = vmatprep.subr.bf16.mxu1 %v5253_v40  ;;  %v4776_v62 = vpack.c.bf16 %v5469_v19, %v5441_v58  ;;  %v239_v20 = vld [vmem:[%s5207_s20 + $0x108] sm:$0xff]  ;;  %v1188_v24 = vand.u32 4294901760, %v254_v54  ;;  %v1191_v41 = vand.u32 4294901760, %v255_v31  ;;  %v240_v9 = vld [vmem:[%s5207_s20 + $0x110] sm:$0xff]  ;;  %v241_v22 = vld [vmem:[%s5207_s20 + $0x118] sm:$0xff]  ;;  %v6435_v27 = vand.u32 4294901760, %v5402_v38 }
  0x63   : > { %4761 = vmatpush3.bf16.msra.mxu0 %v4760_v3  ;;  %v1143_v47 = vand.u32 4294901760, %v239_v20  ;;  %v1146_v11 = vand.u32 4294901760, %v240_v9 }
  0x64   : > { %4763 = vmatprep.subr.bf16.mxu0 %v4762_v0  ;;  %v5634_v4 = vsub.f32 %v255_v31, %v1191_v41  ;;  %v258_v0 = vld [vmem:[%s5207_s20 + $0x1a0] sm:$0xff] }
  0x65   : > { %4789 = vmatpush3.bf16.msra.mxu1 %v5262_v46  ;;  %v5642_v33 = vsub.f32 %v239_v20, %v1143_v47  ;;  %v1200_v19 = vand.u32 4294901760, %v258_v0 }
  0x66   : > { %4791 = vmatprep.subr.bf16.mxu1 %v5286_v63 }
  0x67   : > { %4765 = vmatpush3.bf16.msra.mxu0 %v4764_v13  ;;  %v6436_v13 = vand.u32 4294901760, %v5425_v57 }
  0x68   : > { %4767 = vmatprep.subr.bf16.mxu0 %v4766_v12  ;;  %v259_v12 = vld [vmem:[%s5207_s20 + $0x1a8] sm:$0xff] }
  0x69   : > { %4793 = vmatpush3.bf16.msra.mxu1 %v5305_v17  ;;  %v1203_v31 = vand.u32 4294901760, %v259_v12 }
  0x6a   : > { %4795 = vmatprep.subr.bf16.mxu1 %v5321_v50 }
  0x6b   : > { %4769 = vmatpush3.bf16.msra.mxu0 %v4768_v18 }
  0x6c   : > { %4771 = vmatprep.subr.bf16.mxu0 %v4770_v43  ;;  %v6357_v43 = vand.u32 4294901760, %v5634_v4 }
  0x6d   : > { %4797 = vmatpush3.bf16.msra.mxu1 %v5339_v5 }
  0x6e   : > { %4799 = vmatprep.subr.bf16.mxu1 %v5355_v49 }
  0x6f   : > { %4773 = vmatpush3.bf16.msra.mxu0 %v4772_v51  ;;  %v243_v51 = vld [vmem:[%s5207_s20 + $0x128] sm:$0xff] }
  0x70   : > { %4775 = vmatprep.subr.bf16.mxu0 %v4774_v61 }
  0x71   : > { %4801 = vmatpush3.bf16.msra.mxu1 %v5373_v1 }
  0x72   : > { %4803 = vmatprep.subr.bf16.mxu1 %v6427_v6 }
  0x73   : > { %4777 = vmatpush3.bf16.msra.mxu0 %v4776_v62  ;;  %v6352_v62 = vand.u32 4294901760, %v5642_v33 }
  0x74   : > { %4811 = vmatprep.subr.bf16.mxu0 %v4810_v14  ;;  %v1140_v14 = vand.u32 4294901760, %v238_v56 }
  0x75   : > { %4805 = vmatpush3.bf16.msra.mxu1 %v6429_v8 }
  0x76   : > { %754 = vmatmul.mubr.f32.vlgmr.msra.gmra.mrb[2].mxu0 %v6428_v52  ;;  %4807 = vmatprep.subr.bf16.mxu1 %v6430_v45  ;;  %v5640_v32 = vsub.f32 %v238_v56, %v1140_v14  ;;  %v5678_v57 = vpack.c.bf16 %v1143_v47, %v1140_v14  ;;  %v5705_v14 = vsub.f32 %v240_v9, %v1146_v11 }
  0x77   : > { %4813 = vmatpush3.bf16.msra.mxu0 %v4812_v53  ;;  %1028 = vmatprep.mubr.f32.mxu0 %v6431_v30  ;;  %v5632_v53 = vsub.f32 %v254_v54, %v1188_v24  ;;  %v5724_v9 = vsub.f32 %v259_v12, %v1203_v31 }
  0x78   : > { %4815 = vmatprep.subr.bf16.mxu0 %v4814_v10  ;;  %v6433_v10 = vand.u32 4294901760, %v6428_v52  ;;  %6438 = vst [vmem:[#allocation6_spill] sm:$0xff] %v5678_v57  ;;  %v6355_v61 = vand.u32 4294901760, %v5640_v32 }
  0x79   : > { %4809 = vmatpush3.bf16.msra.mxu1 %v6432_v59  ;;  %v6358_v18 = vand.u32 4294901760, %v5632_v53 }
  0x7a   : > { %4843 = vmatprep.subr.bf16.mxu1 %v5219_v15  ;;  %v6434_v15 = vand.u32 4294901760, %v5391_v7  ;;  %v6437_v7 = vand.u32 4294901760, %v5441_v58  ;;  %v242_v58 = vld [vmem:[%s5207_s20 + $0x120] sm:$0xff] }
  0x7b   : > { %4817 = vmatpush3.bf16.msra.mxu0 %v5530_v42  ;;  %v1194_v42 = vand.u32 4294901760, %v256_v55  ;;  %v1367_v56 = vsub.f32 %v5632_v53, %v6358_v18  ;;  %v1152_v20 = vand.u32 4294901760, %v242_v58 }
  0x7c   : > { %4819 = vmatprep.subr.bf16.mxu0 %v5536_v36  ;;  %862 = vmatmul.mubr.f32.vlgmr.msra.gmra.mrb[2].mxu1 %v6433_v10  ;;  %v5651_v3 = vpack.c.bf16 %v6435_v27, %v6434_v15  ;;  %v1197_v36 = vand.u32 4294901760, %v257_v37  ;;  %v5667_v38 = vpack.c.bf16 %v497_v34, %v6437_v7  ;;  %v244_v7 = vld [vmem:[%s5207_s20 + $0x130] sm:$0xff] }
  0x7d   : > { %4845 = vmatpush3.bf16.msra.mxu1 %v5225_v21  ;;  %1132 = vmatprep.mubr.f32.mxu1 %v6431_v30  ;;  %v5661_v21 = vpack.c.bf16 %v609_v60, %v6436_v13  ;;  %v1149_v60 = vand.u32 4294901760, %v241_v22  ;;  %v5682_v34 = vsub.f32 %v256_v55, %v1194_v42  ;;  %v5712_v55 = vsub.f32 %v258_v0, %v1200_v19 }
  0x7e   : > { %4847 = vmatprep.subr.bf16.mxu1 %v5229_v23  ;;  %v5676_v23 = vpack.c.bf16 %v1191_v41, %v1188_v24  ;;  %v5689_v54 = vsub.f32 %v257_v37, %v1197_v36  ;;  %v1155_v24 = vand.u32 4294901760, %v243_v51  ;;  %v260_v41 = vld [vmem:[%s5207_s20 + $0x1b0] sm:$0xff]  ;;  %v1255_v37 = vsub.f32 %v5640_v32, %v6355_v61 }
  0x7f   : > { %4821 = vmatpush3.bf16.msra.mxu0 %v5542_v26  ;;  %v5673_v26 = vld [vmem:[%s5202_s16 + $0x8] sm:$0x77]  ;;  %v5703_v30 = vpack.c.bf16 %v1149_v60, %v1146_v11  ;;  %v6351_v10 = vand.u32 4294901760, %v5682_v34  ;;  %v1368_v27 = vand.u32 4294901760, %v1367_v56  ;;  %v245_v11 = vld [vmem:[%s5207_s20 + $0x138] sm:$0xff] }
  0x80   : > { %4823 = vmatprep.subr.bf16.mxu0 %v5548_v39  ;;  %v5687_v39 = vpack.c.bf16 %v1197_v36, %v1194_v42  ;;  %v274_v52 = vcombine.high %v5673_v26, %v5673_v26  ;;  %v5722_v42 = vpack.c.bf16 %v1203_v31, %v1200_v19  ;;  %v6349_v15 = vand.u32 4294901760, %v5689_v54 }
  0x81   : > { %4849 = vmatpush3.bf16.msra.mxu1 %v5238_v28  ;;  %v1374_v28 = vsub.f32 %v5634_v4, %v6357_v43  ;;  %6439 = vst [vmem:[#allocation11_spill] sm:$0xff] %v5703_v30  ;;  %v5729_v0 = vpack.c.bf16 %v1155_v24, %v1152_v20  ;;  %v5736_v12 = vsub.f32 %v243_v51, %v1155_v24  ;;  %v1158_v51 = vand.u32 4294901760, %v244_v7 }
  0x82   : > { %4851 = vmatprep.subr.bf16.mxu1 %v5253_v40  ;;  %v261_v40 = vld [vmem:[%s5207_s20 + $0x1b8] sm:$0xff]  ;;  %v5710_v47 = vand.u32 4294901760, %v274_v52  ;;  %6441 = vst [vmem:[#allocation8_spill] sm:$0xff] %v5722_v42  ;;  %v1381_v31 = vsub.f32 %v5682_v34, %v6351_v10 }
  0x83   : > { %4825 = vmatpush3.bf16.msra.mxu0 %v5554_v44  ;;  %v5707_v44 = vsub.f32 %v241_v22, %v1149_v60  ;;  %v1206_v22 = vand.u32 4294901760, %v260_v41  ;;  %v1375_v36 = vand.u32 4294901760, %v1374_v28  ;;  %6442 = vst [vmem:[#allocation10_spill] sm:$0xff] %v5729_v0  ;;  %v1209_v13 = vand.u32 4294901760, %v261_v40  ;;  %v262_v28 = vld [vmem:[%s5207_s20 + $0x1c0] sm:$0xff] }
  0x84   : > { %4827 = vmatprep.subr.bf16.mxu0 %v5560_v2  ;;  %6440 = vst [vmem:[#allocation7_spill] sm:$0xff] %v5710_v47  ;;  %v1262_v2 = vsub.f32 %v5642_v33, %v6352_v62  ;;  %v6350_v60 = vand.u32 4294901760, %v5705_v14  ;;  %v247_v62 = vld [vmem:[%s5207_s20 + $0x148] sm:$0xff] }
  0x85   : > { %4853 = vmatpush3.bf16.msra.mxu1 %v5262_v46  ;;  %v5734_v46 = vsub.f32 %v242_v58, %v1152_v20  ;;  %v6353_v56 = vand.u32 4294901760, %v5707_v44  ;;  %v1388_v58 = vsub.f32 %v5689_v54, %v6349_v15  ;;  %v5755_v20 = vpack.c.bf16 %v1375_v36, %v1368_v27  ;;  %v246_v15 = vld [vmem:[%s5207_s20 + $0x140] sm:$0xff] }
  0x86   : > { %4855 = vmatprep.subr.bf16.mxu1 %v5286_v63  ;;  %v1256_v63 = vand.u32 4294901760, %v1255_v37  ;;  %v1263_v19 = vand.u32 4294901760, %v1262_v2  ;;  %v5757_v24 = vpack.c.bf16 %v1209_v13, %v1206_v22  ;;  %v5759_v37 = vsub.f32 %v261_v40, %v1209_v13 }
  0x87   : > { %4829 = vmatpush3.bf16.msra.mxu0 %v5567_v25  ;;  %v5740_v25 = vsub.f32 %v274_v52, %v5710_v47  ;;  %v1161_v52 = vand.u32 4294901760, %v245_v11  ;;  %v6354_v2 = vand.u32 4294901760, %v5712_v55  ;;  %v1276_v40 = vsub.f32 %v5707_v44, %v6353_v56  ;;  %v265_v56 = vld [vmem:[%s5207_s20 + $0x1d8] sm:$0xff] }
  0x88   : > { %4831 = vmatprep.subr.bf16.mxu0 %v5573_v35  ;;  %v5747_v35 = vsub.f32 %v260_v41, %v1206_v22  ;;  %6443 = vst [vmem:[#allocation9_spill] sm:$0xff] %v5757_v24  ;;  %6444 = vst [vmem:[#allocation12_spill] sm:$0xff] %v5759_v37  ;;  %v1269_v41 = vsub.f32 %v5705_v14, %v6350_v60  ;;  %v5770_v27 = vpack.c.bf16 %v1263_v19, %v1256_v63 }
  0x89   : > { %4857 = vmatpush3.bf16.msra.mxu1 %v5305_v17  ;;  %v263_v17 = vld [vmem:[%s5207_s20 + $0x1c8] sm:$0xff]  ;;  %v1382_v22 = vand.u32 4294901760, %v1381_v31  ;;  %v1212_v36 = vand.u32 4294901760, %v262_v28  ;;  %v5776_v13 = vpack.c.bf16 %v1161_v52, %v1158_v51  ;;  %v5778_v60 = vsub.f32 %v244_v7, %v1158_v51  ;;  %v264_v51 = vld [vmem:[%s5207_s20 + $0x1d0] sm:$0xff] }
  0x8a   : > { %4859 = vmatprep.subr.bf16.mxu1 %v5321_v50  ;;  %v6363_v50 = vand.u32 4294901760, %v5740_v25  ;;  %v1215_v10 = vand.u32 4294901760, %v263_v17  ;;  %v5783_v63 = vsub.f32 %v245_v11, %v1161_v52  ;;  %v1164_v19 = vand.u32 4294901760, %v246_v15 }
  0x8b   : > { %4833 = vmatpush3.bf16.msra.mxu0 %v5579_v16  ;;  %v6356_v16 = vand.u32 4294901760, %v5724_v9  ;;  %6445 = vst [vmem:[#allocation13_spill] sm:$0xff] %v5776_v13  ;;  %v6359_v31 = vand.u32 4294901760, %v5734_v46  ;;  %v1395_v7 = vsub.f32 %v5712_v55, %v6354_v2  ;;  %v1277_v11 = vand.u32 4294901760, %v1276_v40 }
  0x8c   : > { %4835 = vmatprep.subr.bf16.mxu0 %v5651_v3  ;;  %v1389_v3 = vand.u32 4294901760, %v1388_v58  ;;  %v1270_v58 = vand.u32 4294901760, %v1269_v41  ;;  %v1167_v52 = vand.u32 4294901760, %v247_v62  ;;  %v6361_v41 = vand.u32 4294901760, %v5759_v37 }
  0x8d   : > { %4861 = vmatpush3.bf16.msra.mxu1 %v5339_v5  ;;  %v6360_v5 = vand.u32 4294901760, %v5736_v12  ;;  %v5804_v61 = vpack.c.bf16 %v1215_v10, %v1212_v36  ;;  %v5808_v43 = vsub.f32 %v263_v17, %v1215_v10  ;;  %v5812_v40 = vsub.f32 %v246_v15, %v1164_v19  ;;  %v249_v17 = vld [vmem:[%s5207_s20 + $0x158] sm:$0xff] }
  0x8e   : > { %4863 = vmatprep.subr.bf16.mxu1 %v5355_v49  ;;  %v1238_v49 = vsub.f32 %v5740_v25, %v6363_v50  ;;  %v5802_v2 = vpack.c.bf16 %v1389_v3, %v1382_v22  ;;  %v1283_v18 = vsub.f32 %v5734_v46, %v6359_v31  ;;  %v1218_v22 = vand.u32 4294901760, %v264_v51  ;;  %v248_v3 = vld [vmem:[%s5207_s20 + $0x150] sm:$0xff]  ;;  %v5845_v50 = vld [vmem:[%s5207_s20 + $0x1e8] sm:$0xff] }
  0x8f   : > { %4837 = vmatpush3.bf16.msra.mxu0 %v5587_v29  ;;  %v1402_v29 = vsub.f32 %v5724_v9, %v6356_v16  ;;  %v5806_v16 = vsub.f32 %v262_v28, %v1212_v36  ;;  %6446 = vst [vmem:[#allocation14_spill] sm:$0xff] %v5812_v40  ;;  %v1396_v10 = vand.u32 4294901760, %v1395_v7  ;;  %v5823_v15 = vpack.c.bf16 %v1277_v11, %v1270_v58 }
  0x90   : > { %4839 = vmatprep.subr.bf16.mxu0 %v5661_v21  ;;  %v6362_v21 = vand.u32 4294901760, %v5747_v35  ;;  %v5825_v36 = vpack.c.bf16 %v1167_v52, %v1164_v19  ;;  %v5835_v7 = vsub.f32 %v247_v62, %v1167_v52  ;;  %v1284_v11 = vand.u32 4294901760, %v1283_v18 }
  0x91   : > { %4865 = vmatpush3.bf16.msra.mxu1 %v5373_v1  ;;  %v1290_v1 = vsub.f32 %v5736_v12, %v6360_v5  ;;  %v1403_v28 = vand.u32 4294901760, %v1402_v29  ;;  %v1416_v5 = vsub.f32 %v5759_v37, %v6361_v41  ;;  %v1170_v29 = vand.u32 4294901760, %v248_v3  ;;  %v5855_v37 = vld [vmem:[%s5207_s20 + $0x160] sm:$0xff] }
  0x92   : > { %4867 = vmatprep.subr.bf16.mxu1 %v6427_v6  ;;  %v1239_v6 = vand.u32 4294901760, %v1238_v49  ;;  %6447 = vst [vmem:[#allocation15_spill] sm:$0xff] %v5825_v36  ;;  %v1409_v31 = vsub.f32 %v5747_v35, %v6362_v21  ;;  %6448 = vst [vmem:[#allocation16_spill] sm:$0xff] %v5835_v7  ;;  %v5840_v49 = vld [vmem:[%s5207_s20 + $0x1e0] sm:$0xff]  ;;  %v1173_v21 = vand.u32 4294901760, %v249_v17  ;;  %v5851_v58 = vsub.f32 %v264_v51, %v1218_v22 }
  0x93   : > { %4841 = vmatpush3.bf16.msra.mxu0 %v5667_v38  ;;  %v1221_v38 = vand.u32 4294901760, %v265_v56  ;;  %v1291_v41 = vand.u32 4294901760, %v1290_v1  ;;  %v4914_v62 = vpack.c.bf16 %v1403_v28, %v1396_v10  ;;  %v6369_v19 = vand.u32 4294901760, %v5808_v43 }
  0x94   : > { %4875 = vmatprep.subr.bf16.mxu0 %v5676_v23  ;;  %6450 = vst [vmem:[#allocation18_spill] sm:$0xff] %v5851_v58  ;;  %v1410_v18 = vand.u32 4294901760, %v1409_v31  ;;  %v1417_v1 = vand.u32 4294901760, %v1416_v5  ;;  %v5861_v10 = vsub.f32 %v248_v3, %v1170_v29  ;;  %v6452_v51 = vand.u32 4294901760, %v5778_v60  ;;  %v5878_v3 = vld [vmem:[%s5207_s20 + $0x168] sm:$0xff] }
  0x95   : > { %4869 = vmatpush3.bf16.msra.mxu1 %v6429_v8  ;;  %v6368_v8 = vand.u32 4294901760, %v5806_v16  ;;  %v5849_v52 = vpack.c.bf16 %v1221_v38, %v1218_v22  ;;  %v6453_v28 = vand.u32 4294901760, %v5783_v63  ;;  %v4916_v31 = vpack.c.bf16 %v1291_v41, %v1284_v11  ;;  %v5888_v41 = vld [vmem:[%s5207_s20 + $0x1f0] sm:$0xff] }
  0x96   : > { %1030 = vmatmul.mubr.f32.vlgmr.msra.gmra.mrb[4].mxu0 %v5449_v48  ;;  %4871 = vmatprep.subr.bf16.mxu1 %v6430_v45  ;;  %v5857_v45 = vsub.f32 %v265_v56, %v1221_v38  ;;  %v1297_v22 = vsub.f32 %v5778_v60, %v6452_v51  ;;  %v1430_v51 = vsub.f32 %v5808_v43, %v6369_v19  ;;  %v6454_v11 = vand.u32 4294901760, %v5845_v50 }
  0x97   : > { %4877 = vmatpush3.bf16.msra.mxu0 %v5678_v57  ;;  %6449 = vst [vmem:[#allocation17_spill] sm:$0xff] %v5849_v52  ;;  %1240 = vmatprep.mubr.f32.mxu0 %v1239_v6  ;;  %v6370_v57 = vand.u32 4294901760, %v5840_v49  ;;  %v1304_v6 = vsub.f32 %v5783_v63, %v6453_v28  ;;  %v1423_v5 = vsub.f32 %v5806_v16, %v6368_v8 }
  0x98   : > { %4879 = vmatprep.subr.bf16.mxu0 %v5687_v39  ;;  %6451 = vst [vmem:[#allocation19_spill] sm:$0xff] %v5857_v45  ;;  %v4918_v8 = vpack.c.bf16 %v1417_v1, %v1410_v18  ;;  %v5895_v38 = vsub.f32 %v249_v17, %v1173_v21  ;;  %v1298_v28 = vand.u32 4294901760, %v1297_v22  ;;  %v6455_v18 = vand.u32 4294901760, %v5855_v37 }
  0x99   : > { %4873 = vmatpush3.bf16.msra.mxu1 %v6432_v59  ;;  %v5872_v59 = vpack.c.bf16 %v1173_v21, %v1170_v29  ;;  %v5891_v29 = vld [vmem:[%s5207_s20 + $0x1f8] sm:$0xff]  ;;  %v5900_v19 = vsub.f32 %v5840_v49, %v6370_v57  ;;  %v1305_v56 = vand.u32 4294901760, %v1304_v6  ;;  %v1179_v21 = vand.u32 4294901760, %v5878_v3  ;;  %v5921_v6 = vld [vmem:[%s5207_s20 + $0x170] sm:$0xff] }
  0x9a   : > { %4907 = vmatprep.subr.bf16.mxu1 %v5755_v20  ;;  %v1424_v17 = vand.u32 4294901760, %v1423_v5  ;;  %v1431_v57 = vand.u32 4294901760, %v1430_v51  ;;  %v6456_v20 = vand.u32 4294901760, %v5812_v40  ;;  %v6457_v5 = vand.u32 4294901760, %v5835_v7 }
  0x9b   : > { %4881 = vmatpush3.bf16.msra.mxu0 %v5703_v30  ;;  %v6459_v22 = vand.u32 4294901760, %v5857_v45  ;;  %v6463_v30 = vand.u32 4294901760, %v5895_v38 }
  0x9c   : > { %4883 = vmatprep.subr.bf16.mxu0 %v5722_v42  ;;  %1134 = vmatmul.mubr.f32.vlgmr.msra.gmra.mrb[4].mxu1 %v5449_v48  ;;  %v5907_v48 = vsub.f32 %v5845_v50, %v6454_v11  ;;  %v5924_v11 = vld [vmem:[%s5207_s20 + $0x178] sm:$0xff]  ;;  %v6461_v42 = vand.u32 4294901760, %v5891_v29 }
  0x9d   : > { %4909 = vmatpush3.bf16.msra.mxu1 %v5770_v27  ;;  %1476 = vmatprep.mubr.f32.mxu1 %v5710_v47  ;;  %v5916_v27 = vsub.f32 %v5855_v37, %v6455_v18  ;;  %v1318_v18 = vsub.f32 %v5835_v7, %v6457_v5  ;;  %v6458_v47 = vand.u32 4294901760, %v5851_v58  ;;  %v5946_v5 = vsub.f32 %v5878_v3, %v1179_v21 }
  0x9e   : > { %4911 = vmatprep.subr.bf16.mxu1 %v5802_v2  ;;  %v1311_v2 = vsub.f32 %v5812_v40, %v6456_v20  ;;  %v4920_v20 = vpack.c.bf16 %v1305_v56, %v1298_v28  ;;  %v1182_v7 = vand.u32 4294901760, %v5921_v6  ;;  %v4922_v28 = vpack.c.bf16 %v1431_v57, %v1424_v17 }
  0x9f   : > { %4885 = vmatpush3.bf16.msra.mxu0 %v5729_v0  ;;  %v1437_v1 = vsub.f32 %v5851_v58, %v6458_v47  ;;  %v1444_v0 = vsub.f32 %v5857_v45, %v6459_v22  ;;  %v1185_v47 = vand.u32 4294901760, %v5924_v11  ;;  %v6460_v22 = vand.u32 4294901760, %v5888_v41 }
  0xa0   : > { %4887 = vmatprep.subr.bf16.mxu0 %v5757_v24  ;;  %v5942_v24 = vand.u32 4294901760, %v5673_v26  ;;  %v1312_v45 = vand.u32 4294901760, %v1311_v2  ;;  %v6462_v40 = vand.u32 4294901760, %v5861_v10  ;;  %v5975_v3 = vsub.f32 %v5921_v6, %v1182_v7 }
  0xa1   : > { %4913 = vmatpush3.bf16.msra.mxu1 %v5823_v15  ;;  %v5954_v51 = vsub.f32 %v5888_v41, %v6460_v22  ;;  %v5959_v15 = vsub.f32 %v5891_v29, %v6461_v42  ;;  %v1445_v58 = vand.u32 4294901760, %v1444_v0  ;;  %v1332_v42 = vsub.f32 %v5895_v38, %v6463_v30 }
  0xa2   : > { %4915 = vmatprep.subr.bf16.mxu1 %v4914_v62  ;;  %v1438_v62 = vand.u32 4294901760, %v1437_v1  ;;  %v1325_v22 = vsub.f32 %v5861_v10, %v6462_v40  ;;  %v5972_v56 = vsub.f32 %v5673_v26, %v5942_v24  ;;  %v5978_v57 = vsub.f32 %v5924_v11, %v1185_v47 }
  0xa3   : > { %4889 = vmatpush3.bf16.msra.mxu0 %v5776_v13  ;;  %v1319_v13 = vand.u32 4294901760, %v1318_v18  ;;  %v6464_v30 = vand.u32 4294901760, %v5900_v19  ;;  %v6465_v26 = vand.u32 4294901760, %v5907_v48  ;;  %v6466_v11 = vand.u32 4294901760, %v5840_v49 }
  0xa4   : > { %4891 = vmatprep.subr.bf16.mxu0 %v5804_v61  ;;  %v6467_v2 = vand.u32 4294901760, %v5845_v50  ;;  %v4926_v0 = vpack.c.bf16 %v1445_v58, %v1438_v62  ;;  %v1243_v1 = vand.u32 4294901760, %v5972_v56  ;;  %v6469_v6 = vand.u32 4294901760, %v5916_v27 }
  0xa5   : > { %4917 = vmatpush3.bf16.msra.mxu1 %v4916_v31  ;;  %v1451_v40 = vsub.f32 %v5900_v19, %v6464_v30  ;;  %v1458_v31 = vsub.f32 %v5907_v48, %v6465_v26  ;;  %v4924_v30 = vpack.c.bf16 %v1319_v13, %v1312_v45  ;;  %v1333_v26 = vand.u32 4294901760, %v1332_v42 }
  0xa6   : > { %4919 = vmatprep.subr.bf16.mxu1 %v4918_v8  ;;  %v5996_v18 = vpack.c.bf16 %v6467_v2, %v6466_v11  ;;  %v6468_v8 = vand.u32 4294901760, %v5855_v37  ;;  %v6470_v49 = vand.u32 4294901760, %v5946_v5  ;;  %v1352_v11 = vand.u32 4294901760, %v5975_v3 }
  0xa7   : > { %4893 = vmatpush3.bf16.msra.mxu0 %v5825_v36  ;;  %v1326_v36 = vand.u32 4294901760, %v1325_v22  ;;  %v1359_v37 = vand.u32 4294901760, %v5978_v57  ;;  %v1452_v13 = vand.u32 4294901760, %v1451_v40  ;;  %v1459_v58 = vand.u32 4294901760, %v1458_v31 }
  0xa8   : > { %4895 = vmatprep.subr.bf16.mxu0 %v5849_v52  ;;  %v6000_v17 = vpack.c.bf16 %v1179_v21, %v6468_v8  ;;  %v1339_v52 = vsub.f32 %v5916_v27, %v6469_v6  ;;  %v1346_v50 = vsub.f32 %v5946_v5, %v6470_v49  ;;  %v6471_v45 = vand.u32 4294901760, %v5954_v51 }
  0xa9   : > { %4921 = vmatpush3.bf16.msra.mxu1 %v4920_v20  ;;  %v6472_v20 = vand.u32 4294901760, %v5959_v15  ;;  %v6473_v22 = vand.u32 4294901760, %v5888_v41  ;;  %v6474_v42 = vand.u32 4294901760, %v5891_v29  ;;  %v4928_v2 = vpack.c.bf16 %v1333_v26, %v1326_v36 }
  0xaa   : > { %4923 = vmatprep.subr.bf16.mxu1 %v4922_v28  ;;  %v1465_v21 = vsub.f32 %v5954_v51, %v6471_v45  ;;  %v1244_v28 = vsub.f32 %v5972_v56, %v1243_v1  ;;  %v1340_v40 = vand.u32 4294901760, %v1339_v52  ;;  %v1347_v31 = vand.u32 4294901760, %v1346_v50 }
  0xab   : > { %4897 = vmatpush3.bf16.msra.mxu0 %v5872_v59  ;;  %v1472_v62 = vsub.f32 %v5959_v15, %v6472_v20  ;;  %v6023_v6 = vpack.c.bf16 %v6474_v42, %v6473_v22  ;;  %v1353_v8 = vsub.f32 %v5975_v3, %v1352_v11  ;;  %v1360_v41 = vsub.f32 %v5978_v57, %v1359_v37  ;;  %v6475_v22 = vld [vmem:[#allocation12_spill] sm:$0xff] }
  0xac   : > { %4899 = vmatprep.subr.bf16.mxu0 %v5996_v18  ;;  %v6035_v29 = vpack.c.bf16 %v1185_v47, %v1182_v7  ;;  %v4930_v36 = vpack.c.bf16 %v1459_v58, %v1452_v13  ;;  %v1466_v26 = vand.u32 4294901760, %v1465_v21  ;;  %v4938_v52 = vpack.c.bf16 %v5634_v4, %v5632_v53 }
  0xad   : > { %4925 = vmatpush3.bf16.msra.mxu1 %v4924_v30  ;;  %v1473_v49 = vand.u32 4294901760, %v1472_v62  ;;  %v1245_v30 = vand.u32 4294901760, %v1244_v28  ;;  %v4932_v50 = vpack.c.bf16 %v1347_v31, %v1340_v40  ;;  %v1354_v45 = vand.u32 4294901760, %v1353_v8  ;;  %v6478_v8 = vld [vmem:[#allocation11_spill] sm:$0xff] }
  0xae   : > { %4927 = vmatprep.subr.bf16.mxu1 %v4926_v0  ;;  %v1361_v20 = vand.u32 4294901760, %v1360_v41  ;;  %v4940_v7 = vpack.c.bf16 %v5642_v33, %v5640_v32  ;;  %v4942_v0 = vpack.c.bf16 %v5689_v54, %v5682_v34  ;;  %v4944_v58 = vpack.c.bf16 %v5707_v44, %v5705_v14  ;;  %v6479_v41 = vld [vmem:[#allocation8_spill] sm:$0xff] }
  0xaf   : > { %4901 = vmatpush3.bf16.msra.mxu0 %v6000_v17  ;;  %v4934_v47 = vpack.c.bf16 %v1473_v49, %v1466_v26  ;;  %v4946_v21 = vpack.c.bf16 %v5724_v9, %v5712_v55  ;;  %v4948_v62 = vpack.c.bf16 %v5736_v12, %v5734_v46  ;;  %v4950_v42 = vpack.c.bf16 %v6475_v22, %v5747_v35  ;;  %v6481_v26 = vld [vmem:[#allocation16_spill] sm:$0xff] }
  0xb0   : > { %4903 = vmatprep.subr.bf16.mxu0 %v6023_v6  ;;  %v4936_v13 = vpack.c.bf16 %v1361_v20, %v1354_v45  ;;  %v6477_v28 = vand.u32 4294901760, %v5740_v25  ;;  %v4952_v40 = vpack.c.bf16 %v5783_v63, %v5778_v60  ;;  %v4954_v31 = vpack.c.bf16 %v5808_v43, %v5806_v16  ;;  %v6485_v45 = vld [vmem:[#allocation9_spill] sm:$0xff] }
  0xb1   : > { %4929 = vmatpush3.bf16.msra.mxu1 %v4928_v2  ;;  %v6476_v2 = vld [vmem:[#allocation6_spill] sm:$0xff]  ;;  %v4960_v20 = vpack.c.bf16 %v5895_v38, %v5861_v10 }
  0xb2   : > { %4931 = vmatprep.subr.bf16.mxu1 %v4930_v36  ;;  %v6480_v36 = vld [vmem:[#allocation14_spill] sm:$0xff] }
  0xb3   : > { %4905 = vmatpush3.bf16.msra.mxu0 %v6035_v29  ;;  %v4956_v49 = vpack.c.bf16 %v6481_v26, %v6480_v36 }
  0xb4   : > { %4939 = vmatprep.subr.bf16.mxu0 %v4938_v52  ;;  %v6483_v52 = vld [vmem:[#allocation19_spill] sm:$0xff] }
  0xb5   : > { %4933 = vmatpush3.bf16.msra.mxu1 %v4932_v50  ;;  %v6484_v50 = vld [vmem:[#allocation10_spill] sm:$0xff] }
  0xb6   : > { %1246 = vmatmul.mubr.f32.vlgmr.msra.gmra.mrb[6].mxu0 %v1245_v30  ;;  %4935 = vmatprep.subr.bf16.mxu1 %v4934_v47  ;;  %v6486_v47 = vld [vmem:[#allocation13_spill] sm:$0xff] }
  0xb7   : > { %4941 = vmatpush3.bf16.msra.mxu0 %v4940_v7  ;;  %1613 = vmatprep.mubr.f32.mxu0 %v5740_v25  ;;  %v6482_v25 = vld [vmem:[#allocation18_spill] sm:$0xff]  ;;  %v4962_v7 = vpack.c.bf16 %v5907_v48, %v5900_v19 }
  0xb8   : > { %4943 = vmatprep.subr.bf16.mxu0 %v4942_v0  ;;  %v4958_v30 = vpack.c.bf16 %v6483_v52, %v6482_v25  ;;  %v4964_v0 = vpack.c.bf16 %v5946_v5, %v5916_v27 }
  0xb9   : > { %4937 = vmatpush3.bf16.msra.mxu1 %v4936_v13  ;;  %v4966_v13 = vpack.c.bf16 %v5959_v15, %v5954_v51 }
  0xba   : > { %4971 = vmatprep.subr.bf16.mxu1 %v5676_v23 }
  0xbb   : > { %4945 = vmatpush3.bf16.msra.mxu0 %v4944_v58  ;;  %v6487_v58 = vld [vmem:[#allocation15_spill] sm:$0xff] }
  0xbc   : > { %4947 = vmatprep.subr.bf16.mxu0 %v4946_v21  ;;  %1478 = vmatmul.mubr.f32.vlgmr.msra.gmra.mrb[6].mxu1 %v5942_v24  ;;  %v6488_v21 = vld [vmem:[#allocation17_spill] sm:$0xff] }
  0xbd   : > { %4973 = vmatpush3.bf16.msra.mxu1 %v6476_v2  ;;  %1720 = vmatprep.mubr.f32.mxu1 %v6477_v28  ;;  %v6490_v28 = vand.u32 4294901760, %v5634_v4  ;;  %v6496_v4 = vand.u32 4294901760, %v5707_v44  ;;  %v6502_v44 = vand.u32 4294901760, %v5747_v35  ;;  %v6507_v35 = vand.u32 4294901760, %v5808_v43 }
  0xbe   : > { %4975 = vmatprep.subr.bf16.mxu1 %v5687_v39  ;;  %v6512_v43 = vand.u32 4294901760, %v5861_v10  ;;  %v6518_v10 = vand.u32 4294901760, %v5954_v51 }
  0xbf   : > { %4949 = vmatpush3.bf16.msra.mxu0 %v4948_v62  ;;  %v4968_v62 = vpack.c.bf16 %v5978_v57, %v5975_v3 }
  0xc0   : > { %4951 = vmatprep.subr.bf16.mxu0 %v4950_v42  ;;  %v6489_v42 = vand.u32 4294901760, %v5632_v53  ;;  %v6495_v53 = vand.u32 4294901760, %v5705_v14  ;;  %v6501_v14 = vand.u32 4294901760, %v5736_v12  ;;  %v6506_v12 = vand.u32 4294901760, %v5806_v16 }
  0xc1   : > { %4977 = vmatpush3.bf16.msra.mxu1 %v6478_v8  ;;  %v6513_v16 = vand.u32 4294901760, %v5895_v38  ;;  %v6519_v38 = vand.u32 4294901760, %v5959_v15 }
  0xc2   : > { %4979 = vmatprep.subr.bf16.mxu1 %v6479_v41 }
  0xc3   : > { %4953 = vmatpush3.bf16.msra.mxu0 %v4952_v40  ;;  %v5002_v40 = vpack.c.bf16 %v6490_v28, %v6489_v42 }
  0xc4   : > { %4955 = vmatprep.subr.bf16.mxu0 %v4954_v31  ;;  %v6491_v31 = vand.u32 4294901760, %v5640_v32  ;;  %v5008_v32 = vpack.c.bf16 %v6496_v4, %v6495_v53 }
  0xc5   : > { %4981 = vmatpush3.bf16.msra.mxu1 %v6484_v50 }
  0xc6   : > { %4983 = vmatprep.subr.bf16.mxu1 %v6485_v45 }
  0xc7   : > { %4957 = vmatpush3.bf16.msra.mxu0 %v4956_v49  ;;  %v6492_v49 = vand.u32 4294901760, %v5642_v33  ;;  %v6497_v33 = vand.u32 4294901760, %v5712_v55  ;;  %v6503_v55 = vand.u32 4294901760, %v6475_v22  ;;  %v5018_v22 = vpack.c.bf16 %v6507_v35, %v6506_v12 }
  0xc8   : > { %4959 = vmatprep.subr.bf16.mxu0 %v4958_v30 }
  0xc9   : > { %4985 = vmatpush3.bf16.msra.mxu1 %v6486_v47  ;;  %v5004_v30 = vpack.c.bf16 %v6492_v49, %v6491_v31  ;;  %v5014_v28 = vpack.c.bf16 %v6503_v55, %v6502_v44 }
  0xca   : > { %4987 = vmatprep.subr.bf16.mxu1 %v5804_v61 }
  0xcb   : > { %4961 = vmatpush3.bf16.msra.mxu0 %v4960_v20  ;;  %v6493_v20 = vand.u32 4294901760, %v5682_v34  ;;  %v6498_v34 = vand.u32 4294901760, %v5724_v9  ;;  %v6505_v9 = vand.u32 4294901760, %v5783_v63  ;;  %v6511_v63 = vand.u32 4294901760, %v6483_v52 }
  0xcc   : > { %4963 = vmatprep.subr.bf16.mxu0 %v4962_v7  ;;  %v6494_v7 = vand.u32 4294901760, %v5689_v54  ;;  %v6499_v54 = vld [vmem:[#allocation7_spill] sm:$0xff]  ;;  %v6517_v52 = vand.u32 4294901760, %v5946_v5 }
  0xcd   : > { %4989 = vmatpush3.bf16.msra.mxu1 %v6487_v58 }
  0xce   : > { %4991 = vmatprep.subr.bf16.mxu1 %v6488_v21 }
  0xcf   : > { %4965 = vmatpush3.bf16.msra.mxu0 %v4964_v0  ;;  %v5006_v0 = vpack.c.bf16 %v6494_v7, %v6493_v20 }
  0xd0   : > { %4967 = vmatprep.subr.bf16.mxu0 %v4966_v13  ;;  %v5010_v13 = vpack.c.bf16 %v6498_v34, %v6497_v33 }
  0xd1   : > { %4993 = vmatpush3.bf16.msra.mxu1 %v5872_v59 }
  0xd2   : > { %4995 = vmatprep.subr.bf16.mxu1 %v5996_v18 }
  0xd3   : > { %4969 = vmatpush3.bf16.msra.mxu0 %v4968_v62  ;;  %v6500_v62 = vand.u32 4294901760, %v5734_v46 }
  0xd4   : > { %5003 = vmatprep.subr.bf16.mxu0 %v5002_v40 }
  0xd5   : > { %4997 = vmatpush3.bf16.msra.mxu1 %v6000_v17  ;;  %v5012_v42 = vpack.c.bf16 %v6501_v14, %v6500_v62 }
  0xd6   : > { %1616 = vmatmul.mubr.f32.vlgmr.msra.gmra.mrb[8].mxu0 %v5972_v56  ;;  %4999 = vmatprep.subr.bf16.mxu1 %v6023_v6  ;;  %v6508_v56 = vand.u32 4294901760, %v6480_v36  ;;  %v6515_v36 = vand.u32 4294901760, %v5907_v48 }
  0xd7   : > { %5005 = vmatpush3.bf16.msra.mxu0 %v5004_v30  ;;  %1890 = vmatprep.mubr.f32.mxu0 %v6499_v54 }
  0xd8   : > { %5007 = vmatprep.subr.bf16.mxu0 %v5006_v0 }
  0xd9   : > { %5001 = vmatpush3.bf16.msra.mxu1 %v6035_v29 }
  0xda   : > { %5035 = vmatprep.subr.bf16.mxu1 %v5676_v23  ;;  %v6504_v23 = vand.u32 4294901760, %v5778_v60  ;;  %v6510_v60 = vand.u32 4294901760, %v6482_v25  ;;  %v6516_v25 = vand.u32 4294901760, %v5916_v27 }
  0xdb   : > { %5009 = vmatpush3.bf16.msra.mxu0 %v5008_v32 }
  0xdc   : > { %5011 = vmatprep.subr.bf16.mxu0 %v5010_v13  ;;  %1724 = vmatmul.mubr.f32.vlgmr.msra.gmra.mrb[8].mxu1 %v1243_v1  ;;  %v5016_v46 = vpack.c.bf16 %v6505_v9, %v6504_v23 }
  0xdd   : > { %5037 = vmatpush3.bf16.msra.mxu1 %v6476_v2  ;;  %1994 = vmatprep.mubr.f32.mxu1 %v6499_v54  ;;  %v5022_v2 = vpack.c.bf16 %v6511_v63, %v6510_v60 }
  0xde   : > { %5039 = vmatprep.subr.bf16.mxu1 %v5687_v39  ;;  %v6509_v39 = vand.u32 4294901760, %v6481_v26 }
  0xdf   : > { %5013 = vmatpush3.bf16.msra.mxu0 %v5012_v42 }
  0xe0   : > { %5015 = vmatprep.subr.bf16.mxu0 %v5014_v28  ;;  %v5020_v1 = vpack.c.bf16 %v6509_v39, %v6508_v56  ;;  %v270_v39 = vld [vmem:[#allocation2] sm:$0x7] }
  0xe1   : > { %5041 = vmatpush3.bf16.msra.mxu1 %v6478_v8  ;;  %v5024_v8 = vpack.c.bf16 %v6513_v16, %v6512_v43 }
  0xe2   : > { %5043 = vmatprep.subr.bf16.mxu1 %v6479_v41  ;;  %v6514_v41 = vand.u32 4294901760, %v5900_v19 }
  0xe3   : > { %5017 = vmatpush3.bf16.msra.mxu0 %v5016_v46 }
  0xe4   : > { %5019 = vmatprep.subr.bf16.mxu0 %v5018_v22  ;;  %v5026_v26 = vpack.c.bf16 %v6515_v36, %v6514_v41 }
  0xe5   : > { %5045 = vmatpush3.bf16.msra.mxu1 %v6484_v50  ;;  %v5028_v50 = vpack.c.bf16 %v6517_v52, %v6516_v25 }
  0xe6   : > { %5047 = vmatprep.subr.bf16.mxu1 %v6485_v45  ;;  %v5030_v45 = vpack.c.bf16 %v6519_v38, %v6518_v10 }
  0xe7   : > { %5021 = vmatpush3.bf16.msra.mxu0 %v5020_v1 }
  0xe8   : > { %5023 = vmatprep.subr.bf16.mxu0 %v5022_v2 }
  0xe9   : > { %5049 = vmatpush3.bf16.msra.mxu1 %v6486_v47 }
  0xea   : > { %5051 = vmatprep.subr.bf16.mxu1 %v5804_v61  ;;  %v5032_v61 = vpack.c.bf16 %v1359_v37, %v1352_v11 }
  0xeb   : > { %5025 = vmatpush3.bf16.msra.mxu0 %v5024_v8 }
  0xec   : > { %5027 = vmatprep.subr.bf16.mxu0 %v5026_v26 }
  0xed   : > { %5053 = vmatpush3.bf16.msra.mxu1 %v6487_v58 }
  0xee   : > { %5055 = vmatprep.subr.bf16.mxu1 %v6488_v21 }
  0xef   : > { %5029 = vmatpush3.bf16.msra.mxu0 %v5028_v50 }
  0xf0   : > { %5031 = vmatprep.subr.bf16.mxu0 %v5030_v45 }
  0xf1   : > { %5057 = vmatpush3.bf16.msra.mxu1 %v5872_v59 }
  0xf2   : > { %5059 = vmatprep.subr.bf16.mxu1 %v5996_v18 }
  0xf3   : > { %5033 = vmatpush3.bf16.msra.mxu0 %v5032_v61 }
  0xf5   : > { %5061 = vmatpush3.bf16.msra.mxu1 %v6000_v17 }
  0xf6   : > { %1892 = vmatmul.mubr.f32.vlgmr.msra.gmra.mrb[10].mxu0 %v5942_v24  ;;  %5063 = vmatprep.subr.bf16.mxu1 %v6023_v6 }
  0xf9   : > { %5065 = vmatpush3.bf16.msra.mxu1 %v6035_v29 }
  0xfc   : > { %1996 = vmatmul.mubr.f32.vlgmr.msra.gmra.mrb[10].mxu1 %v5942_v24 }
 0x129   : > { %v4138_v19 = vpop.f32.mrb[0].mxu0 }
 0x12a   : > { %v4139_v48 = vpop.f32.mrb[1].mxu0 }
 0x12b   : > { %v4140_v27 = vadd.f32 %v4139_v48, %v4138_v19 }
 0x12f   : > { %v4173_v51 = vpop.f32.mrb[0].mxu1 }
 0x130   : > { %v4174_v5 = vpop.f32.mrb[1].mxu1 }
 0x131   : > { %v4175_v15 = vadd.f32 %v4174_v5, %v4173_v51 }
 0x133   : > { %v618_v59 = vadd.f32 %v4175_v15, %v4140_v27 }
 0x149   : > { %v4208_v3 = vpop.f32.mrb[2].mxu0 }
 0x14a   : > { %v4209_v57 = vpop.f32.mrb[3].mxu0 }
 0x14b   : > { %v4210_v18 = vadd.f32 %v4209_v57, %v4208_v3 }
 0x14d   : > { %v756_v11 = vadd.f32 %v4210_v18, %v618_v59 }
 0x14f   : > { %v4243_v37 = vpop.f32.mrb[2].mxu1 }
 0x150   : > { %v4244_v47 = vpop.f32.mrb[3].mxu1 }
 0x151   : > { %v4245_v17 = vadd.f32 %v4244_v47, %v4243_v37 }
 0x153   : > { %v864_v58 = vadd.f32 %v4245_v17, %v756_v11 }
 0x169   : > { %v4278_v6 = vpop.f32.mrb[4].mxu0 }
 0x16a   : > { %v4279_v21 = vpop.f32.mrb[5].mxu0 }
 0x16b   : > { %v4280_v29 = vadd.f32 %v4279_v21, %v4278_v6 }
 0x16d   : > { %v1032_v40 = vadd.f32 %v4280_v29, %v864_v58 }
 0x16f   : > { %v4313_v24 = vpop.f32.mrb[4].mxu1 }
 0x170   : > { %v4314_v31 = vpop.f32.mrb[5].mxu1 }
 0x171   : > { %v4315_v49 = vadd.f32 %v4314_v31, %v4313_v24 }
 0x173   : > { %v1136_v30 = vadd.f32 %v4315_v49, %v1032_v40 }
 0x189   : > { %v4348_v20 = vpop.f32.mrb[6].mxu0 }
 0x18a   : > { %v4349_v7 = vpop.f32.mrb[7].mxu0 }
 0x18b   : > { %v4350_v0 = vadd.f32 %v4349_v7, %v4348_v20 }
 0x18d   : > { %v1248_v53 = vadd.f32 %v4350_v0, %v1136_v30 }
 0x18f   : > { %v4383_v4 = vpop.f32.mrb[6].mxu1 }
 0x190   : > { %v4384_v32 = vpop.f32.mrb[7].mxu1 }
 0x191   : > { %v4385_v33 = vadd.f32 %v4384_v32, %v4383_v4 }
 0x193   : > { %v1480_v34 = vadd.f32 %v4385_v33, %v1248_v53 }
 0x1a9   : > { %v4418_v13 = vpop.f32.mrb[8].mxu0 }
 0x1aa   : > { %v4419_v54 = vpop.f32.mrb[9].mxu0 }
 0x1ab   : > { %v4420_v62 = vadd.f32 %v4419_v54, %v4418_v13 }
 0x1ad   : > { %v1618_v14 = vadd.f32 %v4420_v62, %v1480_v34 }
 0x1af   : > { %v4453_v42 = vpop.f32.mrb[8].mxu1 }
 0x1b0   : > { %v4454_v44 = vpop.f32.mrb[9].mxu1 }
 0x1b1   : > { %v4455_v55 = vadd.f32 %v4454_v44, %v4453_v42 }
 0x1b3   : > { %v1726_v28 = vadd.f32 %v4455_v55, %v1618_v14 }
 0x1c9   : > { %v4488_v23 = vpop.f32.mrb[10].mxu0 }
 0x1ca   : > { %v4489_v9 = vpop.f32.mrb[11].mxu0 }
 0x1cb   : > { %v4490_v46 = vadd.f32 %v4489_v9, %v4488_v23 }
 0x1cd   : > { %v1894_v12 = vadd.f32 %v4490_v46, %v1726_v28 }
 0x1cf   : > { %v4523_v35 = vpop.f32.mrb[10].mxu1 }
 0x1d0   : > { %v4524_v22 = vpop.f32.mrb[11].mxu1 }
 0x1d1   : > { %v4525_v56 = vadd.f32 %v4524_v22, %v4523_v35 }
 0x1d3   : > { %v1998_v1 = vadd.f32 %v4525_v56, %v1894_v12 }
 0x1d5   : > { %v2001_v60 = vadd.f32 %v1998_v1, %v270_v39 }
 0x1d7   : > { %2003 = vst.msk [vmem:[#allocation2] sm:$0x7] %vm2002_vm1, %v2001_v60 }
 0x1d8 PF: > { %p4101_p7 = scmp.ne.s32.totalorder %s5193_s10, 3 }
 0x1d9   : > { %v2158_v63 = vld [vmem:[%s5207_s20] sm:$0xff] (!%p4101_p7)  ;;  %v2159_v2 = vld [vmem:[%s5207_s20 + $0x8] sm:$0xff] (!%p4101_p7)  ;;  %v2160_v43 = vld [vmem:[%s5207_s20 + $0x10] sm:$0xff] (!%p4101_p7)  ;;  %v2008_v16 = vlaneseq (!%p4101_p7)  ;;  %v5165_v8 = vmov (!%p4101_p7), 0.0|0.0   ;;  %vm5166_vm2 = vmmov (!%p4101_p7), 0   ;;  %v5167_v10 = vmov (!%p4101_p7), 0.0  }
 0x1da   : > { %2007 = sbr.rel (%p4101_p7) target bundleno = 873 (0x369), region = 40  ;;  %5066 = vmatprep.subr.bf16.mxu0 (!%p4101_p7), %v5165_v8  ;;  %v2288_v41 = vand.u32 (!%p4101_p7), 4294901760, %v2158_v63  ;;  %v2291_v36 = vand.u32 (!%p4101_p7), 4294901760, %v2159_v2  ;;  %v2161_v26 = vld [vmem:[%s5207_s20 + $0x18] sm:$0xff] (!%p4101_p7)  ;;  %v2294_v25 = vand.u32 (!%p4101_p7), 4294901760, %v2160_v43  ;;  %5072 = vmatprep.subr.bf16.mxu1 (!%p4101_p7), %v5165_v8  ;;  %v2162_v15 = vld [vmem:[%s5207_s20 + $0x20] sm:$0xff] (!%p4101_p7) }
 0x1db   : > { %v2297_v52 = vand.u32 (!%p4101_p7), 4294901760, %v2161_v26  ;;  %v2030_v50 = vshrl.u32 (!%p4101_p7), %v2008_v16, 7  ;;  %4584 = vmatprep.mubr.msk.f32.mxu0 (!%p4101_p7), %vm5166_vm2, %v5167_v10  ;;  %v2009_v38 = vand.u32 (!%p4101_p7), 127, %v2008_v16  ;;  %v2017_v45 = vld [vmem:[%s5202_s16] sm:$0x77] (!%p4101_p7)  ;;  %4597 = vmatprep.mubr.msk.f32.mxu1 (!%p4101_p7), %vm5166_vm2, %v5167_v10  ;;  %vm4012_vm5 = vcmask (!%p4101_p7), 34816  }
 0x1dc   : > { %v6190_v61 = vpack.c.bf16 (!%p4101_p7), %v2291_v36, %v2288_v41  ;;  %v2401_v19 = vsub.f32 (!%p4101_p7), %v2158_v63, %v2288_v41  ;;  %v2408_v48 = vsub.f32 (!%p4101_p7), %v2159_v2, %v2291_v36  ;;  %v6192_v27 = vsub.f32 (!%p4101_p7), %v2160_v43, %v2294_v25  ;;  %s5168_s21 = smov (!%p4101_p7), 15   ;;  %s5169_s22 = smov (!%p4101_p7), 5  }
 0x1dd   : > { %v6194_v51 = vsub.f32 (!%p4101_p7), %v2161_v26, %v2297_v52  ;;  %v2034_v5 = vadd.s32 (!%p4101_p7), 32, %v2030_v50  ;;  %vm2013_vm3 = vcmp.lt.s32.totalorder (!%p4101_p7), %v2009_v38, 37  ;;  %v6198_v59 = vpack.c.bf16 (!%p4101_p7), %v2297_v52, %v2294_v25  ;;  %s5170_s23 = smov (!%p4101_p7), 10  }
 0x1de   : > { %5068 = vmatpush3.bf16.msra.mxu0 (!%p4101_p7), %v6190_v61  ;;  %v2402_v3 = vand.u32 (!%p4101_p7), 4294901760, %v2401_v19  ;;  %v2409_v57 = vand.u32 (!%p4101_p7), 4294901760, %v2408_v48  ;;  %v2025_v18 = vsel (!%p4101_p7), %vm2013_vm3, %v2017_v45, 0.0  ;;  %v2416_v37 = vand.u32 (!%p4101_p7), 4294901760, %v6192_v27 }
 0x1df   : > { %5069 = vmatprep.subr.bf16.mxu0 (!%p4101_p7), %v5165_v8  ;;  %vm2098_vm4 = vcmp.lt.s32.totalorder (!%p4101_p7), %v2034_v5, 37  ;;  %v6201_v11 = vand.u32 (!%p4101_p7), 4294901760, %v2025_v18  ;;  %v2423_v47 = vand.u32 (!%p4101_p7), 4294901760, %v6194_v51  ;;  %v5079_v33 = vpack.c.bf16 (!%p4101_p7), %v2408_v48, %v2401_v19 }
 0x1e0   : > { %v2403_v17 = vsub.f32 (!%p4101_p7), %v2401_v19, %v2402_v3  ;;  %v2410_v58 = vsub.f32 (!%p4101_p7), %v2408_v48, %v2409_v57  ;;  %v2226_v6 = vsel (!%p4101_p7), %vm2098_vm4, %v2162_v15, 0.0  ;;  %v2417_v40 = vsub.f32 (!%p4101_p7), %v6192_v27, %v2416_v37  ;;  %v2286_v15 = vld [vmem:[#allocation2] sm:$0x7] (!%p4101_p7) }
 0x1e1   : > { %v6205_v21 = vand.u32 4294901760, %v2226_v6  ;;  %v2390_v29 = vsub.f32 %v2025_v18, %v6201_v11  ;;  %v2424_v24 = vsub.f32 %v6194_v51, %v2423_v47  ;;  %v5082_v62 = vpack.c.bf16 %v6194_v51, %v6192_v27 }
 0x1e2   : > { %5071 = vmatpush3.bf16.msra.mxu0 %v6198_v59  ;;  %v2404_v31 = vand.u32 4294901760, %v2403_v17  ;;  %v2411_v49 = vand.u32 4294901760, %v2410_v58  ;;  %v2418_v20 = vand.u32 4294901760, %v2417_v40  ;;  %v5091_v42 = vpack.c.bf16 %v2409_v57, %v2402_v3 }
 0x1e3   : > { %4582 = vmatprep.subr.mxu0 %v5167_v10  ;;  %v2391_v30 = vand.u32 4294901760, %v2390_v29  ;;  %v2425_v7 = vand.u32 4294901760, %v2424_v24  ;;  %v2429_v0 = vsub.f32 %v2226_v6, %v6205_v21  ;;  %v5094_v44 = vpack.c.bf16 %v2423_v47, %v2416_v37 }
 0x1e4   : > { %v5073_v53 = vpack.c.bf16 %v2411_v49, %v2404_v31  ;;  %vm4025_vm6 = vcmask 39936   ;;  %vm4027_vm7 = vcmask 80896   ;;  %vm4029_vm8 = vcmask 121856  }
 0x1e5   : > { %v2392_v4 = vsub.f32 %v2390_v29, %v2391_v30  ;;  %v2430_v32 = vand.u32 4294901760, %v2429_v0  ;;  %v5076_v34 = vpack.c.bf16 %v2425_v7, %v2418_v20  ;;  %vm4031_vm9 = vcmask 157696  }
 0x1e6   : > { %5074 = vmatpush3.bf16.msra.mxu1 %v5073_v53  ;;  %4583 = vmatpush3.msra.mxu0 %v6205_v21 }
 0x1e7   : > { %5078 = vmatprep.subr.bf16.mxu0 %v5165_v8  ;;  %v2393_v13 = vand.u32 4294901760, %v2392_v4  ;;  %5075 = vmatprep.subr.bf16.mxu1 %v5165_v8  ;;  %v2431_v54 = vsub.f32 %v2429_v0, %v2430_v32 }
 0x1e9   : > { %4585 = vmatmul.mubr.f32.vlgmr.msra.gmra.mrb[0].mxu0 %v2393_v13  ;;  %v2432_v14 = vand.u32 4294901760, %v2431_v54 }
 0x1ea   : > { %5080 = vmatpush3.bf16.msra.mxu0 %v5079_v33  ;;  %5077 = vmatpush3.bf16.msra.mxu1 %v5076_v34 }
 0x1eb   : > { %5081 = vmatprep.subr.bf16.mxu0 %v5165_v8  ;;  %4595 = vmatprep.subr.mxu1 %v5167_v10 }
 0x1ec   : > { %4610 = vmatprep.mubr.msk.f32.mxu0 %vm5166_vm2, %v5167_v10 }
 0x1ee   : > { %5083 = vmatpush3.bf16.msra.mxu0 %v5082_v62  ;;  %4596 = vmatpush3.msra.mxu1 %v2432_v14 }
 0x1ef   : > { %4598 = vmatmul.mubr.f32.vlgmr.msra.gmra.mrb[0].mxu1 %v6201_v11  ;;  %5084 = vmatprep.subr.bf16.mxu1 %v5165_v8 }
 0x1f0   : > { %4608 = vmatprep.subr.mxu0 %v5167_v10  ;;  %5086 = vmatpush3.bf16.msra.mxu1 %v6190_v61 }
 0x1f1   : > { %5087 = vmatprep.subr.bf16.mxu1 %v5165_v8  ;;  %4623 = vmatprep.mubr.msk.f32.mxu1 %vm5166_vm2, %v5167_v10 }
 0x1f2   : > { %4609 = vmatpush3.msra.mxu0 %v2429_v0 }
 0x1f3   : > { %4611 = vmatmul.mubr.f32.vlgmr.msra.gmra.mrb[2].mxu0 %v2390_v29  ;;  %5090 = vmatprep.subr.bf16.mxu0 %v5165_v8 }
 0x1f4   : > { %5092 = vmatpush3.bf16.msra.mxu0 %v5091_v42  ;;  %5089 = vmatpush3.bf16.msra.mxu1 %v6198_v59 }
 0x1f5   : > { %5093 = vmatprep.subr.bf16.mxu0 %v5165_v8  ;;  %4621 = vmatprep.subr.mxu1 %v5167_v10 }
 0x1f6   : > { %4636 = vmatprep.mubr.msk.f32.mxu0 %vm5166_vm2, %v5167_v10 }
 0x1f8   : > { %5095 = vmatpush3.bf16.msra.mxu0 %v5094_v44  ;;  %4622 = vmatpush3.msra.mxu1 %v6205_v21 }
 0x1f9   : > { %4624 = vmatmul.mubr.f32.vlgmr.msra.gmra.mrb[2].mxu1 %v2391_v30  ;;  %5096 = vmatprep.subr.bf16.mxu1 %v5165_v8 }
 0x1fa   : > { %4634 = vmatprep.subr.mxu0 %v5167_v10  ;;  %5098 = vmatpush3.bf16.msra.mxu1 %v6190_v61 }
 0x1fb   : > { %5099 = vmatprep.subr.bf16.mxu1 %v5165_v8  ;;  %4649 = vmatprep.mubr.msk.f32.mxu1 %vm5166_vm2, %v5167_v10 }
 0x1fc   : > { %4635 = vmatpush3.msra.mxu0 %v2430_v32 }
 0x1fd   : > { %4637 = vmatmul.mubr.f32.vlgmr.msra.gmra.mrb[4].mxu0 %v6201_v11  ;;  %4652 = vmatprep.subr.mxu0 %v5167_v10 }
 0x1fe   : > { %5101 = vmatpush3.bf16.msra.mxu1 %v6198_v59  ;;  %4653 = vmatpush3.msra.mxu0 %v5167_v10 }
 0x1ff   : > { %4647 = vmatprep.subr.mxu1 %v5167_v10  ;;  %4654 = vmatprep.mubr.msk.f32.mxu0 %vm5166_vm2, %v5167_v10 }
 0x200   : > { %4662 = vmatprep.subr.mxu0 %v5167_v10 }
 0x201   : > { %4655 = vmatmul.mubr.f32.vlgmr.msra.gmra.mrb[6].mxu0 %v5167_v10 }
 0x202   : > { %4648 = vmatpush3.msra.mxu1 %v6205_v21  ;;  %4663 = vmatpush3.msra.mxu0 %v5167_v10 }
 0x203   : > { %4650 = vmatmul.mubr.f32.vlgmr.msra.gmra.mrb[4].mxu1 %v6201_v11  ;;  %4657 = vmatprep.subr.mxu1 %v5167_v10 }
 0x204   : > { %4658 = vmatpush3.msra.mxu1 %v5167_v10  ;;  %4659 = vmatprep.mubr.msk.f32.mxu1 %vm5166_vm2, %v5167_v10 }
 0x205   : > { %4667 = vmatprep.subr.mxu1 %v5167_v10  ;;  %4664 = vmatprep.mubr.msk.f32.mxu0 %vm5166_vm2, %v5167_v10 }
 0x206   : > { %4665 = vmatmul.mubr.f32.vlgmr.msra.gmra.mrb[8].mxu0 %v5167_v10  ;;  %4672 = vmatprep.subr.mxu0 %v5167_v10 }
 0x207   : > { %4660 = vmatmul.mubr.f32.vlgmr.msra.gmra.mrb[6].mxu1 %v5167_v10  ;;  %4673 = vmatpush3.msra.mxu0 %v5167_v10 }
 0x208   : > { %4668 = vmatpush3.msra.mxu1 %v5167_v10  ;;  %4669 = vmatprep.mubr.msk.f32.mxu1 %vm5166_vm2, %v5167_v10 }
 0x209   : > { %4677 = vmatprep.subr.mxu1 %v5167_v10  ;;  %4674 = vmatprep.mubr.msk.f32.mxu0 %vm5166_vm2, %v5167_v10 }
 0x20a   : > { %4675 = vmatmul.mubr.f32.vlgmr.msra.gmra.mrb[10].mxu0 %v5167_v10 }
 0x20b   : > { %4670 = vmatmul.mubr.f32.vlgmr.msra.gmra.mrb[8].mxu1 %v5167_v10 }
 0x20c   : > { %4678 = vmatpush3.msra.mxu1 %v5167_v10  ;;  %4679 = vmatprep.mubr.msk.f32.mxu1 %vm5166_vm2, %v5167_v10 }
 0x20f   : > { %4680 = vmatmul.mubr.f32.vlgmr.msra.gmra.mrb[10].mxu1 %v5167_v10 }
 0x2bc   : > { %v2395_v55 = vpop.f32.mrb[0].mxu0 }
 0x2bd   : > { %v4586_v28 = vpop.f32.mrb[1].mxu0 }
 0x2c2   : > { %v2627_v23 = vpop.f32.mrb[0].mxu1 }
 0x2c3   : > { %v2628_v9 = vadd.f32 %v2627_v23, %v2395_v55  ;;  %v4599_v46 = vpop.f32.mrb[1].mxu1 }
 0x2c6   : > { %v2765_v12 = vpop.f32.mrb[2].mxu0 }
 0x2c7   : > { %v2766_v35 = vadd.f32 %v2765_v12, %v2628_v9  ;;  %v4612_v22 = vpop.f32.mrb[3].mxu0 }
 0x2cc   : > { %v2873_v56 = vpop.f32.mrb[2].mxu1 }
 0x2cd   : > { %v2874_v39 = vadd.f32 %v2873_v56, %v2766_v35  ;;  %v4625_v1 = vpop.f32.mrb[3].mxu1 }
 0x2d0   : > { %v3041_v60 = vpop.f32.mrb[4].mxu0 }
 0x2d1   : > { %v3042_v63 = vadd.f32 %v3041_v60, %v2874_v39  ;;  %v4638_v2 = vpop.f32.mrb[5].mxu0 }
 0x2d4   : > { %v3257_v43 = vpop.f32.mrb[6].mxu0 }
 0x2d5   : > { %v4656_v16 = vpop.f32.mrb[7].mxu0 }
 0x2d6   : > { %v3145_v8 = vpop.f32.mrb[4].mxu1 }
 0x2d7   : > { %v3146_v41 = vadd.f32 %v3145_v8, %v3042_v63  ;;  %v4651_v36 = vpop.f32.mrb[5].mxu1 }
 0x2d9   : > { %v3258_v26 = vadd.f32 %v3257_v43, %v3146_v41  ;;  %v3627_v25 = vpop.f32.mrb[8].mxu0 }
 0x2da   : > { %v3489_v52 = vpop.f32.mrb[6].mxu1  ;;  %v4666_v50 = vpop.f32.mrb[9].mxu0 }
 0x2db   : > { %v3490_v10 = vadd.f32 %v3489_v52, %v3258_v26  ;;  %v4661_v38 = vpop.f32.mrb[7].mxu1 }
 0x2dd   : > { %v3628_v45 = vadd.f32 %v3627_v25, %v3490_v10  ;;  %v3903_v61 = vpop.f32.mrb[10].mxu0 }
 0x2de   : > { %v3735_v19 = vpop.f32.mrb[8].mxu1  ;;  %v4676_v48 = vpop.f32.mrb[11].mxu0 }
 0x2df   : > { %v3736_v27 = vadd.f32 %v3735_v19, %v3628_v45  ;;  %v4671_v51 = vpop.f32.mrb[9].mxu1 }
 0x2e1   : > { %v3904_v5 = vadd.f32 %v3903_v61, %v3736_v27 }
 0x2e2   : > { %v4007_v59 = vpop.f32.mrb[10].mxu1 }
 0x2e3   : > { %v4008_v3 = vadd.f32 %v4007_v59, %v3904_v5  ;;  %v4681_v57 = vpop.f32.mrb[11].mxu1 }
 0x2e5   : > { %v4011_v18 = vadd.f32 %v4008_v3, %v2286_v15 }
 0x2e7   : > { %4013 = vst.msk [vmem:[#allocation2] sm:$0x7] %vm4012_vm5, %v4011_v18 }
 0x2ee   : > { %v4014_v11 = vld [vmem:[#allocation2] sm:$0x7] }
 0x2ef   : > { %4022 = vrot.lane.b32.xlu1 %v4014_v11, %s5168_s21  ;;  %4016 = vrot.lane.b32.xlu0 %v4014_v11, %s5169_s22 }
 0x2f3   : > { %4019 = vrot.lane.b32.xlu0 %v4014_v11, %s5170_s23 }
 0x361   : > { %v4017_v37 = vpop.permute.xlu0 %4016  ;;  %v4023_v58 = vpop.permute.xlu1 %4022 }
 0x362   : > { %v4026_v47 = vsel %vm4025_vm6, %v4014_v11, %v4017_v37 }
 0x365   : > { %v4020_v17 = vpop.permute.xlu0 %4019 }
 0x366   : > { %v4028_v6 = vsel %vm4027_vm7, %v4026_v47, %v4020_v17 }
 0x367   : > { %v4030_v21 = vsel %vm4029_vm8, %v4028_v6, %v4023_v58 }
 0x368   : > { %4032 = vst.msk [vmem:[#allocation3] sm:$0x7] %vm4031_vm9, %v4030_v21 }
 0x369 PF: > { %p5106_p8 = scmp.eq.s32.totalorder %s5193_s10, 3  ;;  %s5171_s24 = smov [#allocation3]  }
 0x36a   : > { %s4040_s25 = sshll.u32 %s5171_s24, 4  ;;  %s4041_s25 = int_to_ptr.vmem [resolvable:$true] %s4040_s25 }
 0x36b   : > { %s5126_s26 = scalar_lea.vmem %s4041_s25, 64  ;;  %p5133_p12 = scmp.lt.s32.totalorder %s4041_s25, %s4041_s25 }
 0x36c   : > { %p5127_p9 = scmp.ne.s32.totalorder %s4041_s25, %s5126_s26  ;;  %p5134_p13 = scmp.lt.s32.totalorder %s5126_s26, %s5126_s26 }
 0x36e   : > { %p5128_p10 = pnand %p5127_p9, %p5106_p8  ;;  %p5135_p0 = por %p5134_p13, %p5133_p12 }
 0x370   : > { %p5129_p11 = pneg %p5128_p10 }
 0x372   : > { %p5136_p1 = pnand %p5135_p0, %p5129_p11 }
 0x374   : > { %5139 = shalt.err (!%p5136_p1)
}
 0x375   : > { %s5140_s29 = scalar_lea.hbm %s6305_s2, 64 }
 0x376   : > { %p5141_p2 = scmp.ne.s32.totalorder %s6305_s2, %s5140_s29  ;;  %p5146_p5 = scmp.lt.u32.totalorder %s5140_s29, %s6305_s2 }
 0x378   : > { %p5142_p3 = pnand %p5141_p2, %p5106_p8 }
 0x37a   : > { %p5143_p4 = pneg %p5142_p3 }
 0x37c   : > { %p5148_p6 = pnand %p5146_p5, %p5143_p4 }
 0x37e   : > { %5151 = shalt.err (!%p5148_p6)
}
 0x37f   : > { %5103 = dma.vmem_to_hbm [thread:$0]  (%p5106_p8), %s4041_s25, 64, %s6305_s2, [#allocation4]  }
 0x380   : > { %5157 = dma.done.wait (%p5106_p8), [#allocation4], 64  }
 0x381   : > { %5159 = vsyncadd (%p5106_p8), [#allocation4], 4294967232 }
 0x382 PF: > { %s13_s9 = sadd.s32 1, %s5162_s9  }
 0x383   : > { %p10_p7 = scmp.ge.s32.totalorder %s13_s9, 6  }
 0x385   :  { %12 = sbr.rel (!%p10_p7) target bundleno = 1 (0x1), region = 70 }
 0x38c   :  { %4053 = vsyncpa [#allocation4], 1 }
 0x38d   :  { %4055 = vsyncpa [#allocation4 + $0x1], 1 }

</bundles_post_ra>
